<compile_context>
chip_gen: v5e
topology: v5e:2x2
jax: 0.10.0
libtpu: 0.0.40
codegen_flags: <defaults>
</compile_context>

<pallas_src>
import functools
import math

import jax
import jax.numpy as jnp
from jax import lax
from jax.experimental import pallas as pl
from jax.experimental.pallas import tpu as pltpu


# ---------------------------------------------------------------------------
# Shared math helpers (used by the kernel body and the pure-JAX reference)
# ---------------------------------------------------------------------------

def _gelu(x):
    # TODO(synk): PyTorch nn.GELU() default is the exact erf-based GELU; the
    # tanh approximation is used here for robust Mosaic lowering (diff ~1e-3).
    c = 0.7978845608028654  # sqrt(2/pi)
    return 0.5 * x * (1.0 + jnp.tanh(c * (x + 0.044715 * x * x * x)))


def _layernorm(x, gamma, beta, eps=1e-5):
    mean = jnp.mean(x, axis=-1, keepdims=True)
    xc = x - mean
    var = jnp.mean(xc * xc, axis=-1, keepdims=True)
    inv = lax.rsqrt(var + eps)
    return xc * inv * gamma + beta


# ---------------------------------------------------------------------------
# Fused Pallas kernel: attention + residual/LN1 + FFN + residual/LN2
# ---------------------------------------------------------------------------

def _decoupled_layer_kernel(
    xv_ref, xm_ref,
    wq_ref, bq_ref,                 # softmax scale pre-folded into wq/bq
    wkv_ref, bkv_ref,               # fused K|V projection, (D, 2D)
    wo_ref, bo_ref,                 # res_param1 pre-folded
    g1_ref, be1_ref,                # LayerNorm1 gamma/beta
    w1_ref, b1_ref, w2_ref, b2_ref,  # FFN (res_param2 pre-folded into w2/b2)
    g2_ref, be2_ref,                # LayerNorm2 gamma/beta
    *rest,                          # (mask_ref?, o_ref)
    nhead, compute_dtype, has_mask,
):
    if has_mask:
        mask_ref, o_ref = rest
    else:
        (o_ref,) = rest
        mask_ref = None

    xv = xv_ref[0]                        # (S_kv, D)
    xm = xm_ref[0]                        # (S_q,  D)
    s_q, d_model = xm.shape
    d_head = d_model // nhead

    def mm(a, b):
        return jnp.dot(a.astype(compute_dtype), b.astype(compute_dtype),
                       preferred_element_type=jnp.float32)

    # --- projections: full-width MXU contractions ----------------------------
    q = mm(xm, wq_ref[...]) + bq_ref[...]          # (S_q, D), already scaled
    kv = mm(xv, wkv_ref[...]) + bkv_ref[...]       # (S_kv, 2D)
    k = kv[:, :d_model]                            # (S_kv, D) static slices
    v = kv[:, d_model:]                            # (S_kv, D)

    wo = wo_ref[...]                               # (D, D), hoisted
    addmask = mask_ref[...] if has_mask else None  # (S_q, S_kv) additive

    # Output-projection bias folded into accumulator init (hoisted broadcast).
    attn = jnp.broadcast_to(bo_ref[...], (s_q, d_model)).astype(jnp.float32)

    # --- multi-head attention; head-concat folded into the out-projection ---
    for h in range(nhead):
        lo = h * d_head
        qh = q[:, lo:lo + d_head]                  # (S_q,  Dh)
        kh = k[:, lo:lo + d_head]                  # (S_kv, Dh)
        vh = v[:, lo:lo + d_head]                  # (S_kv, Dh)

        # scores = q k^T (contract Dh without an explicit transpose)
        s = lax.dot_general(qh, kh, (((1,), (1,)), ((), ())),
                            preferred_element_type=jnp.float32)
        if has_mask:
            s = s + addmask
        s = s - jnp.max(s, axis=-1, keepdims=True)
        p = jnp.exp(s)
        p = p / jnp.sum(p, axis=-1, keepdims=True)

        ctx = jnp.dot(p.astype(compute_dtype), vh.astype(compute_dtype),
                      preferred_element_type=jnp.float32)      # (S_q, Dh)
        attn = attn + mm(ctx, wo[lo:lo + d_head, :])           # (S_q, D)

    # --- residual 1 + LayerNorm 1 (res_param1 pre-folded into wo/bo) --------
    h1 = _layernorm(xm.astype(jnp.float32) + attn, g1_ref[...], be1_ref[...])

    # --- feed-forward (res_param2 pre-folded into w2/b2) --------------------
    f = mm(h1, w1_ref[...]) + b1_ref[...]
    f = _gelu(f)
    f = mm(f, w2_ref[...]) + b2_ref[...]

    # --- residual 2 + LayerNorm 2 --------------------------------------------
    o_ref[0] = _layernorm(h1 + f, g2_ref[...], be2_ref[...]).astype(o_ref.dtype)


# ---------------------------------------------------------------------------
# Wrapper
# ---------------------------------------------------------------------------

def transformer_decoupled_encoder_layer(
    x_visible, x_mask_token, params, mask=None, *,
    nhead, enable_res_param=True, compute_dtype=jnp.float32,
):
    """x_visible: (B, S_kv, D); x_mask_token: (B, S_q, D).

    `mask`: None, an additive float mask, or a boolean mask of shape
    (S_q, S_kv) (True = disallowed), matching nn.MultiheadAttention attn_mask.
    Weights in `params` use right-multiply (in_features, out_features) layout.
    Dropout is treated as identity (inference).
    """
    B, S_kv, D = x_visible.shape
    _, S_q, _ = x_mask_token.shape
    F = params["w1"].shape[1]
    assert D % nhead == 0
    scale = 1.0 / math.sqrt(D // nhead)

    res1 = params["res1"] if enable_res_param else jnp.float32(1.0)
    res2 = params["res2"] if enable_res_param else jnp.float32(1.0)

    # Constant folds done once per call in the wrapper (not per grid step):
    #   * softmax scale into the Q projection,
    #   * residual scaling into the last matmul of each sublayer,
    #   * K|V projection fusion into one wide matmul.
    wq_eff = params["wq"] * scale
    bq_eff = (params["bq"] * scale).reshape(1, D)
    wkv = jnp.concatenate([params["wk"], params["wv"]], axis=1)      # (D, 2D)
    bkv = jnp.concatenate([params["bk"], params["bv"]]).reshape(1, 2 * D)
    wo_eff = params["wo"] * res1
    bo_eff = (params["bo"] * res1).reshape(1, D)
    w2_eff = params["w2"] * res2
    b2_eff = (params["b2"] * res2).reshape(1, D)

    args = [
        x_visible, x_mask_token,
        wq_eff, bq_eff, wkv, bkv,
        wo_eff, bo_eff,
        params["ln1_g"].reshape(1, D), params["ln1_b"].reshape(1, D),
        params["w1"], params["b1"].reshape(1, F),
        w2_eff, b2_eff,
        params["ln2_g"].reshape(1, D), params["ln2_b"].reshape(1, D),
    ]

    has_mask = mask is not None
    if has_mask:
        if mask.dtype == jnp.bool_:
            mask_arr = jnp.where(mask, jnp.float32(-1e9), jnp.float32(0.0))
        else:
            mask_arr = mask.astype(jnp.float32)
        args.append(mask_arr)   # last input (kernel unpacks it from *rest)

    def const_spec(a):
        nd = a.ndim
        return pl.BlockSpec(a.shape, lambda b, _nd=nd: (0,) * _nd)

    in_specs = [
        pl.BlockSpec((1, S_kv, D), lambda b: (b, 0, 0)),   # x_visible
        pl.BlockSpec((1, S_q, D), lambda b: (b, 0, 0)),    # x_mask_token
    ] + [const_spec(a) for a in args[2:]]                  # weights (+ mask)

    kernel = functools.partial(
        _decoupled_layer_kernel, nhead=nhead, compute_dtype=compute_dtype,
        has_mask=has_mask)

    return pl.pallas_call(
        kernel,
        out_shape=jax.ShapeDtypeStruct((B, S_q, D), x_mask_token.dtype),
        grid_spec=pltpu.PrefetchScalarGridSpec(
            num_scalar_prefetch=0,
            grid=(B,),
            in_specs=in_specs,
            out_specs=pl.BlockSpec((1, S_q, D), lambda b: (b, 0, 0)),
        ),
        compiler_params=pltpu.CompilerParams(
            dimension_semantics=("parallel",),
        ),
    )(*args)


# ---------------------------------------------------------------------------
# Pure-JAX reference (mirrors PyTorch forward; eval mode)
# ---------------------------------------------------------------------------

def _reference(x_visible, x_mask_token, params, mask=None, *,
               nhead, enable_res_param=True):
    B, S_kv, D = x_visible.shape
    _, S_q, _ = x_mask_token.shape
    Dh = D // nhead
    scale = 1.0 / math.sqrt(Dh)

    q = x_mask_token @ params["wq"] + params["bq"]
    k = x_visible @ params["wk"] + params["bk"]
    v = x_visible @ params["wv"] + params["bv"]

    qh = q.reshape(B, S_q, nhead, Dh)
    kh = k.reshape(B, S_kv, nhead, Dh)
    vh = v.reshape(B, S_kv, nhead, Dh)

    s = jnp.einsum("bqhd,bkhd->bhqk", qh, kh) * scale
    if mask is not None:
        madd = (jnp.where(mask, -1e9, 0.0) if mask.dtype == jnp.bool_
                else mask.astype(jnp.float32))
        s = s + madd[None, None, :, :]
    p = jax.nn.softmax(s, axis=-1)
    ctx = jnp.einsum("bhqk,bkhd->bqhd", p, vh).reshape(B, S_q, D)
    attn = ctx @ params["wo"] + params["bo"]

    r1 = params["res1"] if enable_res_param else 1.0
    r2 = params["res2"] if enable_res_param else 1.0

    h = _layernorm(x_mask_token + r1 * attn,
                   params["ln1_g"], params["ln1_b"])
    f = _gelu(h @ params["w1"] + params["b1"])
    f = f @ params["w2"] + params["b2"]
    return _layernorm(h + r2 * f, params["ln2_g"], params["ln2_b"])


# ---------------------------------------------------------------------------
# Test
# ---------------------------------------------------------------------------

if __name__ == "__main__":
    B, S_Q, S_KV = 2, 16, 8          # batch, mask-token seq len, visible seq len
    D_MODEL, NHEAD, D_FF = 32, 4, 64

    key = jax.random.PRNGKey(0)
    ks = jax.random.split(key, 20)

    def u(k, shape, fan_in):
        bound = 1.0 / math.sqrt(fan_in)
        return jax.random.uniform(k, shape, jnp.float32, -bound, bound)

    params = dict(
        wq=u(ks[0], (D_MODEL, D_MODEL), D_MODEL), bq=u(ks[1], (D_MODEL,), D_MODEL),
        wk=u(ks[2], (D_MODEL, D_MODEL), D_MODEL), bk=u(ks[3], (D_MODEL,), D_MODEL),
        wv=u(ks[4], (D_MODEL, D_MODEL), D_MODEL), bv=u(ks[5], (D_MODEL,), D_MODEL),
        wo=u(ks[6], (D_MODEL, D_MODEL), D_MODEL), bo=u(ks[7], (D_MODEL,), D_MODEL),
        w1=u(ks[8], (D_MODEL, D_FF), D_MODEL),    b1=u(ks[9], (D_FF,), D_MODEL),
        w2=u(ks[10], (D_FF, D_MODEL), D_FF),      b2=u(ks[11], (D_MODEL,), D_FF),
        ln1_g=1.0 + 0.05 * jax.random.normal(ks[12], (D_MODEL,), jnp.float32),
        ln1_b=0.05 * jax.random.normal(ks[13], (D_MODEL,), jnp.float32),
        ln2_g=1.0 + 0.05 * jax.random.normal(ks[14], (D_MODEL,), jnp.float32),
        ln2_b=0.05 * jax.random.normal(ks[15], (D_MODEL,), jnp.float32),
        # PyTorch initializes res_param to 1e-8; use "trained" values so the
        # sublayer contribution is numerically meaningful in the test.
        res1=jnp.float32(0.5),
        res2=jnp.float32(0.25),
    )

    x_visible = jax.random.normal(ks[16], (B, S_KV, D_MODEL), jnp.float32)
    x_mask_token = jax.random.normal(ks[17], (B, S_Q, D_MODEL), jnp.float32)
    attn_mask = 0.1 * jax.random.normal(ks[18], (S_Q, S_KV), jnp.float32)

    ok = True
    for m in (None, attn_mask):
        out = transformer_decoupled_encoder_layer(
            x_visible, x_mask_token, params, mask=m,
            nhead=NHEAD, enable_res_param=True, compute_dtype=jnp.float32)
        out = jax.block_until_ready(out)

        ref = _reference(x_visible, x_mask_token, params, mask=m,
                         nhead=NHEAD, enable_res_param=True)

        assert out.shape == (B, S_Q, D_MODEL), out.shape
        max_err = float(jnp.max(jnp.abs(out - ref)))
        ok = ok and bool(jnp.allclose(out, ref, atol=1e-4, rtol=1e-4))
        assert ok, max_err

    print("KERNEL_OK")
</pallas_src>

<mosaic_0001>
module attributes {stable_mosaic.version = 11 : i64} {
  func.func @_decoupled_layer_kernel(%arg0: i32, %arg1: memref<1x8x32xf32, #tpu.memory_space<vmem>>, %arg2: memref<1x16x32xf32, #tpu.memory_space<vmem>>, %arg3: memref<32x32xf32, #tpu.memory_space<vmem>>, %arg4: memref<1x32xf32, #tpu.memory_space<vmem>>, %arg5: memref<32x64xf32, #tpu.memory_space<vmem>>, %arg6: memref<1x64xf32, #tpu.memory_space<vmem>>, %arg7: memref<32x32xf32, #tpu.memory_space<vmem>>, %arg8: memref<1x32xf32, #tpu.memory_space<vmem>>, %arg9: memref<1x32xf32, #tpu.memory_space<vmem>>, %arg10: memref<1x32xf32, #tpu.memory_space<vmem>>, %arg11: memref<32x64xf32, #tpu.memory_space<vmem>>, %arg12: memref<1x64xf32, #tpu.memory_space<vmem>>, %arg13: memref<64x32xf32, #tpu.memory_space<vmem>>, %arg14: memref<1x32xf32, #tpu.memory_space<vmem>>, %arg15: memref<1x32xf32, #tpu.memory_space<vmem>>, %arg16: memref<1x32xf32, #tpu.memory_space<vmem>>, %arg17: memref<1x16x32xf32, #tpu.memory_space<vmem>>) attributes {dimension_semantics = [#tpu.dimension_semantics<parallel>], iteration_bounds = array<i64: 2>, scalar_prefetch = 0 : i64, scratch_operands = 0 : i64, tpu.core_type = #tpu.core_type<tc>, window_params = [{transform_indices = @transform_0, window_bounds = array<i64: 1, 8, 32>}, {transform_indices = @transform_1, window_bounds = array<i64: 1, 16, 32>}, {pipeline_mode = #tpu.pipeline_mode<synchronous>, transform_indices = @transform_2, window_bounds = array<i64: 32, 32>}, {pipeline_mode = #tpu.pipeline_mode<synchronous>, transform_indices = @transform_3, window_bounds = array<i64: 1, 32>}, {pipeline_mode = #tpu.pipeline_mode<synchronous>, transform_indices = @transform_4, window_bounds = array<i64: 32, 64>}, {pipeline_mode = #tpu.pipeline_mode<synchronous>, transform_indices = @transform_5, window_bounds = array<i64: 1, 64>}, {pipeline_mode = #tpu.pipeline_mode<synchronous>, transform_indices = @transform_6, window_bounds = array<i64: 32, 32>}, {pipeline_mode = #tpu.pipeline_mode<synchronous>, transform_indices = @transform_7, window_bounds = array<i64: 1, 32>}, {pipeline_mode = #tpu.pipeline_mode<synchronous>, transform_indices = @transform_8, window_bounds = array<i64: 1, 32>}, {pipeline_mode = #tpu.pipeline_mode<synchronous>, transform_indices = @transform_9, window_bounds = array<i64: 1, 32>}, {pipeline_mode = #tpu.pipeline_mode<synchronous>, transform_indices = @transform_10, window_bounds = array<i64: 32, 64>}, {pipeline_mode = #tpu.pipeline_mode<synchronous>, transform_indices = @transform_11, window_bounds = array<i64: 1, 64>}, {pipeline_mode = #tpu.pipeline_mode<synchronous>, transform_indices = @transform_12, window_bounds = array<i64: 64, 32>}, {pipeline_mode = #tpu.pipeline_mode<synchronous>, transform_indices = @transform_13, window_bounds = array<i64: 1, 32>}, {pipeline_mode = #tpu.pipeline_mode<synchronous>, transform_indices = @transform_14, window_bounds = array<i64: 1, 32>}, {pipeline_mode = #tpu.pipeline_mode<synchronous>, transform_indices = @transform_15, window_bounds = array<i64: 1, 32>}, {transform_indices = @transform_16, window_bounds = array<i64: 1, 16, 32>}]} {
    %c0 = arith.constant 0 : index
    %c0_0 = arith.constant 0 : index
    %c0_1 = arith.constant 0 : index
    %0 = vector.load %arg1[%c0, %c0_0, %c0_1] : memref<1x8x32xf32, #tpu.memory_space<vmem>>, vector<1x8x32xf32>
    %1 = vector.shape_cast %0 : vector<1x8x32xf32> to vector<8x32xf32>
    %c0_2 = arith.constant 0 : index
    %c0_3 = arith.constant 0 : index
    %c0_4 = arith.constant 0 : index
    %2 = vector.load %arg2[%c0_2, %c0_3, %c0_4] : memref<1x16x32xf32, #tpu.memory_space<vmem>>, vector<1x16x32xf32>
    %3 = vector.shape_cast %2 : vector<1x16x32xf32> to vector<16x32xf32>
    %c0_5 = arith.constant 0 : index
    %c0_6 = arith.constant 0 : index
    %4 = vector.load %arg3[%c0_5, %c0_6] : memref<32x32xf32, #tpu.memory_space<vmem>>, vector<32x32xf32>
    %cst = arith.constant dense<0.000000e+00> : vector<16x32xf32>
    %5 = tpu.matmul %3, %4, %cst {dimension_numbers = #tpu.dot_dimension_numbers<[1], [0], [0], [1], [0, 0, 1, 1], [], []>} : vector<16x32xf32>, vector<32x32xf32>, vector<16x32xf32> -> vector<16x32xf32>
    %c0_7 = arith.constant 0 : index
    %c0_8 = arith.constant 0 : index
    %6 = vector.load %arg4[%c0_7, %c0_8] : memref<1x32xf32, #tpu.memory_space<vmem>>, vector<1x32xf32>
    %7 = vector.broadcast %6 : vector<1x32xf32> to vector<16x32xf32>
    %8 = arith.addf %5, %7 : vector<16x32xf32>
    %c0_9 = arith.constant 0 : index
    %c0_10 = arith.constant 0 : index
    %9 = vector.load %arg5[%c0_9, %c0_10] : memref<32x64xf32, #tpu.memory_space<vmem>>, vector<32x64xf32>
    %cst_11 = arith.constant dense<0.000000e+00> : vector<8x64xf32>
    %10 = tpu.matmul %1, %9, %cst_11 {dimension_numbers = #tpu.dot_dimension_numbers<[1], [0], [0], [1], [0, 0, 1, 1], [], []>} : vector<8x32xf32>, vector<32x64xf32>, vector<8x64xf32> -> vector<8x64xf32>
    %c0_12 = arith.constant 0 : index
    %c0_13 = arith.constant 0 : index
    %11 = vector.load %arg6[%c0_12, %c0_13] : memref<1x64xf32, #tpu.memory_space<vmem>>, vector<1x64xf32>
    %12 = vector.broadcast %11 : vector<1x64xf32> to vector<8x64xf32>
    %13 = arith.addf %10, %12 : vector<8x64xf32>
    %14 = vector.extract_strided_slice %13 {offsets = [0, 0], sizes = [8, 32], strides = [1, 1]} : vector<8x64xf32> to vector<8x32xf32>
    %15 = vector.extract_strided_slice %13 {offsets = [0, 32], sizes = [8, 32], strides = [1, 1]} : vector<8x64xf32> to vector<8x32xf32>
    %c0_14 = arith.constant 0 : index
    %c0_15 = arith.constant 0 : index
    %16 = vector.load %arg7[%c0_14, %c0_15] : memref<32x32xf32, #tpu.memory_space<vmem>>, vector<32x32xf32>
    %c0_16 = arith.constant 0 : index
    %c0_17 = arith.constant 0 : index
    %17 = vector.load %arg8[%c0_16, %c0_17] : memref<1x32xf32, #tpu.memory_space<vmem>>, vector<1x32xf32>
    %18 = vector.shape_cast %17 : vector<1x32xf32> to vector<1x32xf32>
    %19 = vector.broadcast %18 : vector<1x32xf32> to vector<16x32xf32>
    %20 = vector.extract_strided_slice %8 {offsets = [0, 0], sizes = [16, 8], strides = [1, 1]} : vector<16x32xf32> to vector<16x8xf32>
    %21 = vector.extract_strided_slice %14 {offsets = [0, 0], sizes = [8, 8], strides = [1, 1]} : vector<8x32xf32> to vector<8x8xf32>
    %22 = vector.extract_strided_slice %15 {offsets = [0, 0], sizes = [8, 8], strides = [1, 1]} : vector<8x32xf32> to vector<8x8xf32>
    %cst_18 = arith.constant dense<0.000000e+00> : vector<16x8xf32>
    %23 = tpu.matmul %20, %21, %cst_18 {dimension_numbers = #tpu.dot_dimension_numbers<[1], [1], [0], [0], [0, 0, 1, 0], [], []>} : vector<16x8xf32>, vector<8x8xf32>, vector<16x8xf32> -> vector<16x8xf32>
    %cst_19 = arith.constant dense<0xFF800000> : vector<16xf32>
    %24 = vector.multi_reduction <maximumf>, %23, %cst_19 [1] : vector<16x8xf32> to vector<16xf32>
    %25 = vector.shape_cast %24 : vector<16xf32> to vector<16x1xf32>
    %26 = vector.broadcast %25 : vector<16x1xf32> to vector<16x8xf32>
    %27 = arith.subf %23, %26 : vector<16x8xf32>
    %28 = math.exp %27 : vector<16x8xf32>
    %cst_20 = arith.constant dense<0.000000e+00> : vector<16xf32>
    %29 = vector.multi_reduction <add>, %28, %cst_20 [1] : vector<16x8xf32> to vector<16xf32>
    %30 = vector.shape_cast %29 : vector<16xf32> to vector<16x1xf32>
    %31 = vector.broadcast %30 : vector<16x1xf32> to vector<16x8xf32>
    %32 = arith.divf %28, %31 : vector<16x8xf32>
    %cst_21 = arith.constant dense<0.000000e+00> : vector<16x8xf32>
    %33 = tpu.matmul %32, %22, %cst_21 {dimension_numbers = #tpu.dot_dimension_numbers<[1], [0], [0], [1], [0, 0, 1, 1], [], []>} : vector<16x8xf32>, vector<8x8xf32>, vector<16x8xf32> -> vector<16x8xf32>
    %34 = vector.extract_strided_slice %16 {offsets = [0, 0], sizes = [8, 32], strides = [1, 1]} : vector<32x32xf32> to vector<8x32xf32>
    %cst_22 = arith.constant dense<0.000000e+00> : vector<16x32xf32>
    %35 = tpu.matmul %33, %34, %cst_22 {dimension_numbers = #tpu.dot_dimension_numbers<[1], [0], [0], [1], [0, 0, 1, 1], [], []>} : vector<16x8xf32>, vector<8x32xf32>, vector<16x32xf32> -> vector<16x32xf32>
    %36 = arith.addf %19, %35 : vector<16x32xf32>
    %37 = vector.extract_strided_slice %8 {offsets = [0, 8], sizes = [16, 8], strides = [1, 1]} : vector<16x32xf32> to vector<16x8xf32>
    %38 = vector.extract_strided_slice %14 {offsets = [0, 8], sizes = [8, 8], strides = [1, 1]} : vector<8x32xf32> to vector<8x8xf32>
    %39 = vector.extract_strided_slice %15 {offsets = [0, 8], sizes = [8, 8], strides = [1, 1]} : vector<8x32xf32> to vector<8x8xf32>
    %cst_23 = arith.constant dense<0.000000e+00> : vector<16x8xf32>
    %40 = tpu.matmul %37, %38, %cst_23 {dimension_numbers = #tpu.dot_dimension_numbers<[1], [1], [0], [0], [0, 0, 1, 0], [], []>} : vector<16x8xf32>, vector<8x8xf32>, vector<16x8xf32> -> vector<16x8xf32>
    %cst_24 = arith.constant dense<0xFF800000> : vector<16xf32>
    %41 = vector.multi_reduction <maximumf>, %40, %cst_24 [1] : vector<16x8xf32> to vector<16xf32>
    %42 = vector.shape_cast %41 : vector<16xf32> to vector<16x1xf32>
    %43 = vector.broadcast %42 : vector<16x1xf32> to vector<16x8xf32>
    %44 = arith.subf %40, %43 : vector<16x8xf32>
    %45 = math.exp %44 : vector<16x8xf32>
    %cst_25 = arith.constant dense<0.000000e+00> : vector<16xf32>
    %46 = vector.multi_reduction <add>, %45, %cst_25 [1] : vector<16x8xf32> to vector<16xf32>
    %47 = vector.shape_cast %46 : vector<16xf32> to vector<16x1xf32>
    %48 = vector.broadcast %47 : vector<16x1xf32> to vector<16x8xf32>
    %49 = arith.divf %45, %48 : vector<16x8xf32>
    %cst_26 = arith.constant dense<0.000000e+00> : vector<16x8xf32>
    %50 = tpu.matmul %49, %39, %cst_26 {dimension_numbers = #tpu.dot_dimension_numbers<[1], [0], [0], [1], [0, 0, 1, 1], [], []>} : vector<16x8xf32>, vector<8x8xf32>, vector<16x8xf32> -> vector<16x8xf32>
    %51 = vector.extract_strided_slice %16 {offsets = [8, 0], sizes = [8, 32], strides = [1, 1]} : vector<32x32xf32> to vector<8x32xf32>
    %cst_27 = arith.constant dense<0.000000e+00> : vector<16x32xf32>
    %52 = tpu.matmul %50, %51, %cst_27 {dimension_numbers = #tpu.dot_dimension_numbers<[1], [0], [0], [1], [0, 0, 1, 1], [], []>} : vector<16x8xf32>, vector<8x32xf32>, vector<16x32xf32> -> vector<16x32xf32>
    %53 = arith.addf %36, %52 : vector<16x32xf32>
    %54 = vector.extract_strided_slice %8 {offsets = [0, 16], sizes = [16, 8], strides = [1, 1]} : vector<16x32xf32> to vector<16x8xf32>
    %55 = vector.extract_strided_slice %14 {offsets = [0, 16], sizes = [8, 8], strides = [1, 1]} : vector<8x32xf32> to vector<8x8xf32>
    %56 = vector.extract_strided_slice %15 {offsets = [0, 16], sizes = [8, 8], strides = [1, 1]} : vector<8x32xf32> to vector<8x8xf32>
    %cst_28 = arith.constant dense<0.000000e+00> : vector<16x8xf32>
    %57 = tpu.matmul %54, %55, %cst_28 {dimension_numbers = #tpu.dot_dimension_numbers<[1], [1], [0], [0], [0, 0, 1, 0], [], []>} : vector<16x8xf32>, vector<8x8xf32>, vector<16x8xf32> -> vector<16x8xf32>
    %cst_29 = arith.constant dense<0xFF800000> : vector<16xf32>
    %58 = vector.multi_reduction <maximumf>, %57, %cst_29 [1] : vector<16x8xf32> to vector<16xf32>
    %59 = vector.shape_cast %58 : vector<16xf32> to vector<16x1xf32>
    %60 = vector.broadcast %59 : vector<16x1xf32> to vector<16x8xf32>
    %61 = arith.subf %57, %60 : vector<16x8xf32>
    %62 = math.exp %61 : vector<16x8xf32>
    %cst_30 = arith.constant dense<0.000000e+00> : vector<16xf32>
    %63 = vector.multi_reduction <add>, %62, %cst_30 [1] : vector<16x8xf32> to vector<16xf32>
    %64 = vector.shape_cast %63 : vector<16xf32> to vector<16x1xf32>
    %65 = vector.broadcast %64 : vector<16x1xf32> to vector<16x8xf32>
    %66 = arith.divf %62, %65 : vector<16x8xf32>
    %cst_31 = arith.constant dense<0.000000e+00> : vector<16x8xf32>
    %67 = tpu.matmul %66, %56, %cst_31 {dimension_numbers = #tpu.dot_dimension_numbers<[1], [0], [0], [1], [0, 0, 1, 1], [], []>} : vector<16x8xf32>, vector<8x8xf32>, vector<16x8xf32> -> vector<16x8xf32>
    %68 = vector.extract_strided_slice %16 {offsets = [16, 0], sizes = [8, 32], strides = [1, 1]} : vector<32x32xf32> to vector<8x32xf32>
    %cst_32 = arith.constant dense<0.000000e+00> : vector<16x32xf32>
    %69 = tpu.matmul %67, %68, %cst_32 {dimension_numbers = #tpu.dot_dimension_numbers<[1], [0], [0], [1], [0, 0, 1, 1], [], []>} : vector<16x8xf32>, vector<8x32xf32>, vector<16x32xf32> -> vector<16x32xf32>
    %70 = arith.addf %53, %69 : vector<16x32xf32>
    %71 = vector.extract_strided_slice %8 {offsets = [0, 24], sizes = [16, 8], strides = [1, 1]} : vector<16x32xf32> to vector<16x8xf32>
    %72 = vector.extract_strided_slice %14 {offsets = [0, 24], sizes = [8, 8], strides = [1, 1]} : vector<8x32xf32> to vector<8x8xf32>
    %73 = vector.extract_strided_slice %15 {offsets = [0, 24], sizes = [8, 8], strides = [1, 1]} : vector<8x32xf32> to vector<8x8xf32>
    %cst_33 = arith.constant dense<0.000000e+00> : vector<16x8xf32>
    %74 = tpu.matmul %71, %72, %cst_33 {dimension_numbers = #tpu.dot_dimension_numbers<[1], [1], [0], [0], [0, 0, 1, 0], [], []>} : vector<16x8xf32>, vector<8x8xf32>, vector<16x8xf32> -> vector<16x8xf32>
    %cst_34 = arith.constant dense<0xFF800000> : vector<16xf32>
    %75 = vector.multi_reduction <maximumf>, %74, %cst_34 [1] : vector<16x8xf32> to vector<16xf32>
    %76 = vector.shape_cast %75 : vector<16xf32> to vector<16x1xf32>
    %77 = vector.broadcast %76 : vector<16x1xf32> to vector<16x8xf32>
    %78 = arith.subf %74, %77 : vector<16x8xf32>
    %79 = math.exp %78 : vector<16x8xf32>
    %cst_35 = arith.constant dense<0.000000e+00> : vector<16xf32>
    %80 = vector.multi_reduction <add>, %79, %cst_35 [1] : vector<16x8xf32> to vector<16xf32>
    %81 = vector.shape_cast %80 : vector<16xf32> to vector<16x1xf32>
    %82 = vector.broadcast %81 : vector<16x1xf32> to vector<16x8xf32>
    %83 = arith.divf %79, %82 : vector<16x8xf32>
    %cst_36 = arith.constant dense<0.000000e+00> : vector<16x8xf32>
    %84 = tpu.matmul %83, %73, %cst_36 {dimension_numbers = #tpu.dot_dimension_numbers<[1], [0], [0], [1], [0, 0, 1, 1], [], []>} : vector<16x8xf32>, vector<8x8xf32>, vector<16x8xf32> -> vector<16x8xf32>
    %85 = vector.extract_strided_slice %16 {offsets = [24, 0], sizes = [8, 32], strides = [1, 1]} : vector<32x32xf32> to vector<8x32xf32>
    %cst_37 = arith.constant dense<0.000000e+00> : vector<16x32xf32>
    %86 = tpu.matmul %84, %85, %cst_37 {dimension_numbers = #tpu.dot_dimension_numbers<[1], [0], [0], [1], [0, 0, 1, 1], [], []>} : vector<16x8xf32>, vector<8x32xf32>, vector<16x32xf32> -> vector<16x32xf32>
    %87 = arith.addf %70, %86 : vector<16x32xf32>
    %88 = arith.addf %3, %87 : vector<16x32xf32>
    %c0_38 = arith.constant 0 : index
    %c0_39 = arith.constant 0 : index
    %89 = vector.load %arg9[%c0_38, %c0_39] : memref<1x32xf32, #tpu.memory_space<vmem>>, vector<1x32xf32>
    %c0_40 = arith.constant 0 : index
    %c0_41 = arith.constant 0 : index
    %90 = vector.load %arg10[%c0_40, %c0_41] : memref<1x32xf32, #tpu.memory_space<vmem>>, vector<1x32xf32>
    %cst_42 = arith.constant dense<0.000000e+00> : vector<16xf32>
    %91 = vector.multi_reduction <add>, %88, %cst_42 [1] : vector<16x32xf32> to vector<16xf32>
    %92 = vector.shape_cast %91 : vector<16xf32> to vector<16x1xf32>
    %cst_43 = arith.constant 3.200000e+01 : f32
    %93 = vector.broadcast %cst_43 : f32 to vector<16x1xf32>
    %94 = arith.divf %92, %93 : vector<16x1xf32>
    %95 = vector.broadcast %94 : vector<16x1xf32> to vector<16x32xf32>
    %96 = arith.subf %88, %95 : vector<16x32xf32>
    %97 = arith.mulf %96, %96 : vector<16x32xf32>
    %cst_44 = arith.constant dense<0.000000e+00> : vector<16xf32>
    %98 = vector.multi_reduction <add>, %97, %cst_44 [1] : vector<16x32xf32> to vector<16xf32>
    %99 = vector.shape_cast %98 : vector<16xf32> to vector<16x1xf32>
    %cst_45 = arith.constant 3.200000e+01 : f32
    %100 = vector.broadcast %cst_45 : f32 to vector<16x1xf32>
    %101 = arith.divf %99, %100 : vector<16x1xf32>
    %cst_46 = arith.constant 9.99999974E-6 : f32
    %102 = vector.broadcast %cst_46 : f32 to vector<16x1xf32>
    %103 = arith.addf %101, %102 : vector<16x1xf32>
    %104 = math.rsqrt %103 : vector<16x1xf32>
    %105 = vector.broadcast %104 : vector<16x1xf32> to vector<16x32xf32>
    %106 = arith.mulf %96, %105 : vector<16x32xf32>
    %107 = vector.broadcast %89 : vector<1x32xf32> to vector<16x32xf32>
    %108 = arith.mulf %106, %107 : vector<16x32xf32>
    %109 = vector.broadcast %90 : vector<1x32xf32> to vector<16x32xf32>
    %110 = arith.addf %108, %109 : vector<16x32xf32>
    %c0_47 = arith.constant 0 : index
    %c0_48 = arith.constant 0 : index
    %111 = vector.load %arg11[%c0_47, %c0_48] : memref<32x64xf32, #tpu.memory_space<vmem>>, vector<32x64xf32>
    %cst_49 = arith.constant dense<0.000000e+00> : vector<16x64xf32>
    %112 = tpu.matmul %110, %111, %cst_49 {dimension_numbers = #tpu.dot_dimension_numbers<[1], [0], [0], [1], [0, 0, 1, 1], [], []>} : vector<16x32xf32>, vector<32x64xf32>, vector<16x64xf32> -> vector<16x64xf32>
    %c0_50 = arith.constant 0 : index
    %c0_51 = arith.constant 0 : index
    %113 = vector.load %arg12[%c0_50, %c0_51] : memref<1x64xf32, #tpu.memory_space<vmem>>, vector<1x64xf32>
    %114 = vector.broadcast %113 : vector<1x64xf32> to vector<16x64xf32>
    %115 = arith.addf %112, %114 : vector<16x64xf32>
    %cst_52 = arith.constant 5.000000e-01 : f32
    %116 = vector.broadcast %cst_52 : f32 to vector<16x64xf32>
    %117 = arith.mulf %116, %115 : vector<16x64xf32>
    %cst_53 = arith.constant 4.471500e-02 : f32
    %118 = vector.broadcast %cst_53 : f32 to vector<16x64xf32>
    %119 = arith.mulf %118, %115 : vector<16x64xf32>
    %120 = arith.mulf %119, %115 : vector<16x64xf32>
    %121 = arith.mulf %120, %115 : vector<16x64xf32>
    %122 = arith.addf %115, %121 : vector<16x64xf32>
    %cst_54 = arith.constant 0.797884583 : f32
    %123 = vector.broadcast %cst_54 : f32 to vector<16x64xf32>
    %124 = arith.mulf %123, %122 : vector<16x64xf32>
    %125 = math.tanh %124 : vector<16x64xf32>
    %cst_55 = arith.constant 1.000000e+00 : f32
    %126 = vector.broadcast %cst_55 : f32 to vector<16x64xf32>
    %127 = arith.addf %126, %125 : vector<16x64xf32>
    %128 = arith.mulf %117, %127 : vector<16x64xf32>
    %c0_56 = arith.constant 0 : index
    %c0_57 = arith.constant 0 : index
    %129 = vector.load %arg13[%c0_56, %c0_57] : memref<64x32xf32, #tpu.memory_space<vmem>>, vector<64x32xf32>
    %cst_58 = arith.constant dense<0.000000e+00> : vector<16x32xf32>
    %130 = tpu.matmul %128, %129, %cst_58 {dimension_numbers = #tpu.dot_dimension_numbers<[1], [0], [0], [1], [0, 0, 1, 1], [], []>} : vector<16x64xf32>, vector<64x32xf32>, vector<16x32xf32> -> vector<16x32xf32>
    %c0_59 = arith.constant 0 : index
    %c0_60 = arith.constant 0 : index
    %131 = vector.load %arg14[%c0_59, %c0_60] : memref<1x32xf32, #tpu.memory_space<vmem>>, vector<1x32xf32>
    %132 = vector.broadcast %131 : vector<1x32xf32> to vector<16x32xf32>
    %133 = arith.addf %130, %132 : vector<16x32xf32>
    %134 = arith.addf %110, %133 : vector<16x32xf32>
    %c0_61 = arith.constant 0 : index
    %c0_62 = arith.constant 0 : index
    %135 = vector.load %arg15[%c0_61, %c0_62] : memref<1x32xf32, #tpu.memory_space<vmem>>, vector<1x32xf32>
    %c0_63 = arith.constant 0 : index
    %c0_64 = arith.constant 0 : index
    %136 = vector.load %arg16[%c0_63, %c0_64] : memref<1x32xf32, #tpu.memory_space<vmem>>, vector<1x32xf32>
    %cst_65 = arith.constant dense<0.000000e+00> : vector<16xf32>
    %137 = vector.multi_reduction <add>, %134, %cst_65 [1] : vector<16x32xf32> to vector<16xf32>
    %138 = vector.shape_cast %137 : vector<16xf32> to vector<16x1xf32>
    %cst_66 = arith.constant 3.200000e+01 : f32
    %139 = vector.broadcast %cst_66 : f32 to vector<16x1xf32>
    %140 = arith.divf %138, %139 : vector<16x1xf32>
    %141 = vector.broadcast %140 : vector<16x1xf32> to vector<16x32xf32>
    %142 = arith.subf %134, %141 : vector<16x32xf32>
    %143 = arith.mulf %142, %142 : vector<16x32xf32>
    %cst_67 = arith.constant dense<0.000000e+00> : vector<16xf32>
    %144 = vector.multi_reduction <add>, %143, %cst_67 [1] : vector<16x32xf32> to vector<16xf32>
    %145 = vector.shape_cast %144 : vector<16xf32> to vector<16x1xf32>
    %cst_68 = arith.constant 3.200000e+01 : f32
    %146 = vector.broadcast %cst_68 : f32 to vector<16x1xf32>
    %147 = arith.divf %145, %146 : vector<16x1xf32>
    %cst_69 = arith.constant 9.99999974E-6 : f32
    %148 = vector.broadcast %cst_69 : f32 to vector<16x1xf32>
    %149 = arith.addf %147, %148 : vector<16x1xf32>
    %150 = math.rsqrt %149 : vector<16x1xf32>
    %151 = vector.broadcast %150 : vector<16x1xf32> to vector<16x32xf32>
    %152 = arith.mulf %142, %151 : vector<16x32xf32>
    %153 = vector.broadcast %135 : vector<1x32xf32> to vector<16x32xf32>
    %154 = arith.mulf %152, %153 : vector<16x32xf32>
    %155 = vector.broadcast %136 : vector<1x32xf32> to vector<16x32xf32>
    %156 = arith.addf %154, %155 : vector<16x32xf32>
    %c0_70 = arith.constant 0 : index
    %c0_71 = arith.constant 0 : index
    %c0_72 = arith.constant 0 : index
    %157 = vector.load %arg17[%c0_70, %c0_71, %c0_72] : memref<1x16x32xf32, #tpu.memory_space<vmem>>, vector<1x16x32xf32>
    %158 = vector.shape_cast %157 : vector<1x16x32xf32> to vector<16x32xf32>
    %159 = vector.shape_cast %156 : vector<16x32xf32> to vector<1x16x32xf32>
    tpu.vector_store %arg17[%c0_70, %c0_71, %c0_72], %159 {strides = array<i32>} : memref<1x16x32xf32, #tpu.memory_space<vmem>>, vector<1x16x32xf32>,
    return
  }
  func.func @transform_0(%arg0: i32) -> (i32, i32, i32) {
    %c0_i32 = arith.constant 0 : i32
    %c0_i32_0 = arith.constant 0 : i32
    %c0_i32_1 = arith.constant 0 : i32
    return %arg0, %c0_i32, %c0_i32_0 : i32, i32, i32
  }
  func.func @transform_1(%arg0: i32) -> (i32, i32, i32) {
    %c0_i32 = arith.constant 0 : i32
    %c0_i32_0 = arith.constant 0 : i32
    %c0_i32_1 = arith.constant 0 : i32
    return %arg0, %c0_i32, %c0_i32_0 : i32, i32, i32
  }
  func.func @transform_2(%arg0: i32) -> (i32, i32) {
    %c0_i32 = arith.constant 0 : i32
    %c0_i32_0 = arith.constant 0 : i32
    %c0_i32_1 = arith.constant 0 : i32
    return %c0_i32, %c0_i32_0 : i32, i32
  }
  func.func @transform_3(%arg0: i32) -> (i32, i32) {
    %c0_i32 = arith.constant 0 : i32
    %c0_i32_0 = arith.constant 0 : i32
    %c0_i32_1 = arith.constant 0 : i32
    return %c0_i32, %c0_i32_0 : i32, i32
  }
  func.func @transform_4(%arg0: i32) -> (i32, i32) {
    %c0_i32 = arith.constant 0 : i32
    %c0_i32_0 = arith.constant 0 : i32
    %c0_i32_1 = arith.constant 0 : i32
    return %c0_i32, %c0_i32_0 : i32, i32
  }
  func.func @transform_5(%arg0: i32) -> (i32, i32) {
    %c0_i32 = arith.constant 0 : i32
    %c0_i32_0 = arith.constant 0 : i32
    %c0_i32_1 = arith.constant 0 : i32
    return %c0_i32, %c0_i32_0 : i32, i32
  }
  func.func @transform_6(%arg0: i32) -> (i32, i32) {
    %c0_i32 = arith.constant 0 : i32
    %c0_i32_0 = arith.constant 0 : i32
    %c0_i32_1 = arith.constant 0 : i32
    return %c0_i32, %c0_i32_0 : i32, i32
  }
  func.func @transform_7(%arg0: i32) -> (i32, i32) {
    %c0_i32 = arith.constant 0 : i32
    %c0_i32_0 = arith.constant 0 : i32
    %c0_i32_1 = arith.constant 0 : i32
    return %c0_i32, %c0_i32_0 : i32, i32
  }
  func.func @transform_8(%arg0: i32) -> (i32, i32) {
    %c0_i32 = arith.constant 0 : i32
    %c0_i32_0 = arith.constant 0 : i32
    %c0_i32_1 = arith.constant 0 : i32
    return %c0_i32, %c0_i32_0 : i32, i32
  }
  func.func @transform_9(%arg0: i32) -> (i32, i32) {
    %c0_i32 = arith.constant 0 : i32
    %c0_i32_0 = arith.constant 0 : i32
    %c0_i32_1 = arith.constant 0 : i32
    return %c0_i32, %c0_i32_0 : i32, i32
  }
  func.func @transform_10(%arg0: i32) -> (i32, i32) {
    %c0_i32 = arith.constant 0 : i32
    %c0_i32_0 = arith.constant 0 : i32
    %c0_i32_1 = arith.constant 0 : i32
    return %c0_i32, %c0_i32_0 : i32, i32
  }
  func.func @transform_11(%arg0: i32) -> (i32, i32) {
    %c0_i32 = arith.constant 0 : i32
    %c0_i32_0 = arith.constant 0 : i32
    %c0_i32_1 = arith.constant 0 : i32
    return %c0_i32, %c0_i32_0 : i32, i32
  }
  func.func @transform_12(%arg0: i32) -> (i32, i32) {
    %c0_i32 = arith.constant 0 : i32
    %c0_i32_0 = arith.constant 0 : i32
    %c0_i32_1 = arith.constant 0 : i32
    return %c0_i32, %c0_i32_0 : i32, i32
  }
  func.func @transform_13(%arg0: i32) -> (i32, i32) {
    %c0_i32 = arith.constant 0 : i32
    %c0_i32_0 = arith.constant 0 : i32
    %c0_i32_1 = arith.constant 0 : i32
    return %c0_i32, %c0_i32_0 : i32, i32
  }
  func.func @transform_14(%arg0: i32) -> (i32, i32) {
    %c0_i32 = arith.constant 0 : i32
    %c0_i32_0 = arith.constant 0 : i32
    %c0_i32_1 = arith.constant 0 : i32
    return %c0_i32, %c0_i32_0 : i32, i32
  }
  func.func @transform_15(%arg0: i32) -> (i32, i32) {
    %c0_i32 = arith.constant 0 : i32
    %c0_i32_0 = arith.constant 0 : i32
    %c0_i32_1 = arith.constant 0 : i32
    return %c0_i32, %c0_i32_0 : i32, i32
  }
  func.func @transform_16(%arg0: i32) -> (i32, i32, i32) {
    %c0_i32 = arith.constant 0 : i32
    %c0_i32_0 = arith.constant 0 : i32
    %c0_i32_1 = arith.constant 0 : i32
    return %arg0, %c0_i32, %c0_i32_0 : i32, i32, i32
  }
}

</mosaic_0001>

<bundles_post_ra>
// kernel: tpu_custom_call.1
= control target key start
LH: loop header
LB: loop body
LE: loop exit
PB: predicated region body
PF: predicated region fallthrough
CT: control target
= control target key end

     0   :  { %s2385_s0 = inlined_call_operand.hbm [shape: f32[2,8,32], index: 0, kind: input, shape index: {}]   ;;  %s2386_s1 = inlined_call_operand.vmem [shape: f32[2,16,32], index: 1, kind: input, shape index: {}]   ;;  %s2387_s2 = inlined_call_operand.vmem [shape: f32[32,32], index: 2, kind: input, shape index: {}]   ;;  %s2388_s3 = inlined_call_operand.vmem [shape: f32[1,32], index: 3, kind: input, shape index: {}]   ;;  %s2389_s4 = inlined_call_operand.vmem [shape: f32[32,64], index: 4, kind: input, shape index: {}]   ;;  %s2390_s5 = inlined_call_operand.vmem [shape: f32[1,64], index: 5, kind: input, shape index: {}]   ;;  %s2391_s6 = inlined_call_operand.hbm [shape: f32[32,32], index: 6, kind: input, shape index: {}]   ;;  %s2392_s7 = inlined_call_operand.vmem [shape: f32[1,32], index: 7, kind: input, shape index: {}]   ;;  %s2393_s8 = inlined_call_operand.vmem [shape: f32[1,32], index: 8, kind: input, shape index: {}]   ;;  %s2394_s9 = inlined_call_operand.vmem [shape: f32[1,32], index: 9, kind: input, shape index: {}]   ;;  %s2395_s10 = inlined_call_operand.hbm [shape: f32[32,64], index: 10, kind: input, shape index: {}]   ;;  %s2396_s11 = inlined_call_operand.vmem [shape: f32[1,64], index: 11, kind: input, shape index: {}]   ;;  %s2397_s12 = inlined_call_operand.vmem [shape: f32[64,32], index: 12, kind: input, shape index: {}]   ;;  %s2398_s13 = inlined_call_operand.vmem [shape: f32[1,32], index: 13, kind: input, shape index: {}]   ;;  %s2399_s14 = inlined_call_operand.vmem [shape: f32[1,32], index: 14, kind: input, shape index: {}]   ;;  %s2400_s15 = inlined_call_operand.vmem [shape: f32[1,32], index: 15, kind: input, shape index: {}]   ;;  %s2401_s16 = inlined_call_operand.hbm [shape: f32[2,16,32], index: 16, kind: output, shape index: {}]  }
   0x1   :  { %2411 = sst [smem:[#allocation18_spill]] %s2385_s0 }
   0x2   :  { %2412 = sst [smem:[#allocation19_spill]] %s2391_s6 }
   0x3   :  { %2413 = sst [smem:[#allocation20_spill]] %s2395_s10 }
   0x4   :  { %2414 = sst [smem:[#allocation21_spill]] %s2399_s14 }
   0x5   :  { %2415 = sst [smem:[#allocation22_spill]] %s2400_s15 }
   0x6   :  { %2416 = sst [smem:[#allocation23_spill]] %s2401_s16 }
   0x7   :  { %21 = vsyncpa [#allocation3], 0 }
   0x8   :  { %23 = vsyncpa [#allocation3 + $0x1], 0 }
   0x9   :  { %24 = vsyncpa [#allocation6], 0 }
   0xa   :  { %25 = vsyncpa [#allocation4], 0 }
   0xb   :  { %27 = vsyncpa [#allocation4 + $0x1], 0  ;;  %s2047_s21 = smov 0   ;;  %s2049_s22 = smov 0  }
   0xc   :  { %s2051_s23 = smov 0   ;;  %s2053_s24 = smov 0  }
   0xd LB: > { %2417 = sst [smem:[#allocation12_spill]] %s1934_s21  ;;  %s2071_s28 = sadd.s32 4294967295, %s1946_s24   ;;  %s1946_s24 = sphi %s2053_s24, %s2440_s24   ;;  %s1942_s23 = sphi %s2051_s23, %s2445_s23   ;;  %s1938_s22 = sphi %s2049_s22, %s2444_s22   ;;  %s1934_s21 = sphi %s2047_s21, %s2443_s21  }
   0xe   : > { %2418 = sst [smem:[#allocation13_spill]] %s1942_s23  ;;  %p1597_p0 = scmp.ge.s32.totalorder %s1946_s24, 1 }
   0xf   : > { %s2419_s6 = sld [smem:[#allocation19_spill]]  ;;  %p54_p1 = scmp.eq.s32.totalorder %s2071_s28, 0 }
  0x10   : > { %p410_p2 = scmp.lt.s32.totalorder %s1946_s24, 3  ;;  %s1948_s30 = smov [#allocation5]  }
  0x11   : > { %s435_s0 = sshll.u32 %s1948_s30, 4  ;;  %s2421_s10 = sld [smem:[#allocation20_spill]]  ;;  %s436_s0 = int_to_ptr.vmem [resolvable:$true] %s435_s0 }
  0x12   : > { %p2076_p3 = pnand %p1597_p0, %p410_p2  ;;  %s1949_s20 = smov [#allocation7]  }
  0x13   : > { %s458_s25 = sshll.u32 %s1949_s20, 4  ;;  %s1950_s26 = smov 128   ;;  %s459_s25 = int_to_ptr.vmem [resolvable:$true] %s458_s25 }
  0x14   : > { %p1664_p4 = pneg %p2076_p3  ;;  %s1951_s30 = smov 8  }
  0x15   : > { %s433_s27 = sshll.u32 %s2419_s6, 4  ;;  %s1596_s17 = sadd.s32 4294967294, %s1946_s24   ;;  %s434_s27 = int_to_ptr.hbm [resolvable:$true] %s433_s27 }
  0x16   : > { %p1665_p6 = pnand %p1664_p4, %p54_p1  ;;  %s2090_s18 = sadd.s32 1, %s1946_s24  }
  0x17   : > { %s456_s19 = sshll.u32 %s2421_s10, 4  ;;  %2422 = sst [smem:[#allocation14_spill]] %s2090_s18  ;;  %s457_s19 = int_to_ptr.hbm [resolvable:$true] %s456_s19 }
  0x18   : > { %1667 = dma.hbm_to_vmem [thread:$0]  (!%p1665_p6), %s434_s27, 512, %s436_s0, [#allocation6], %s1950_s26, %s1950_s26, %s1951_s30  }
  0x19   : > { %1670 = dma.hbm_to_vmem [thread:$0]  (!%p1665_p6), %s457_s19, 512, %s459_s25, [#allocation6], %s1950_s26, %s1950_s26, %s1951_s30  }
  0x1a   : > { %s37_s6 = ssub.s32 %s1946_s24, %s2090_s18  ;;  %s40_s10 = sadd.s32 1, %s1942_s23 }
  0x1b   : > { %p38_p7 = scmp.eq.s32.totalorder %s37_s6, 0  ;;  %p47_p8 = scmp.ne.s32.totalorder %s1942_s23, %s1938_s22 }
  0x1c   : > { %p48_p9 = scmp.eq.s32.totalorder %s1946_s24, 0  ;;  %p53_p10 = scmp.ne.s32.totalorder %s1938_s22, %s1934_s21 }
  0x1d   : > { %s2101_s20 = scalar_select %p38_p7, %s1942_s23, %s40_s10  }
  0x1e   : > { %p2103_p11 = por %p48_p9, %p47_p8  ;;  %p2109_p12 = por %p54_p1, %p53_p10 }
  0x1f   : > { %2423 = sst [smem:[#allocation15_spill]] %s2101_s20  ;;  %p397_p13 = scmp.eq.s32.totalorder %s2071_s28, 1 }
  0x20   : > { %p403_p0 = scmp.eq.s32.totalorder %s1596_s17, 1  ;;  %p1681_p2 = scmp.lt.s32.totalorder %s1946_s24, 2 }
  0x21   : > { %s487_s0 = sand.u32 1, %s1942_s23   ;;  %p2116_p4 = por %p397_p13, %p47_p8 }
  0x22   : > { %p2120_p6 = por %p403_p0, %p53_p10  ;;  %s1601_s19 = sshll.u32 %s487_s0, 3 }
  0x23   : > { %s2426_s6 = scalar_select %p2116_p4, 1, 0 }
  0x24   : > { %s2428_s10 = scalar_select %p2120_p6, 1, 0 }
  0x25   : > { %2427 = sst [smem:[#allocation16_spill]] %s2426_s6  ;;  %s1602_s25 = sshll.u32 %s1946_s24, 3 }
  0x26   : > { %2429 = sst [smem:[#allocation17_spill]] %s2428_s10  ;;  %s491_s21 = scalar_lea.vmem [#allocation2], %s1601_s19 }
  0x27   : > { %s2430_s20 = sld [smem:[#allocation18_spill]]  ;;  %s499_s15 = sshll.u32 %s491_s21, 4  ;;  %s500_s15 = int_to_ptr.vmem [resolvable:$true] %s499_s15 }
  0x28   : > { %p2130_p7 = pnand %p1681_p2, %p2103_p11  ;;  %s488_s23 = scalar_lea.sflag [#allocation3], %s487_s0 }
  0x2a   : > { %p1850_p9 = pneg %p2130_p7 }
  0x2d   : > { %s495_s18 = scalar_lea.hbm %s2430_s20, %s1602_s25 }
  0x2e   : > { %s497_s14 = sshll.u32 %s495_s18, 4  ;;  %s1853_s18 = scalar_lea.hbm %s2430_s20, 16  ;;  %s498_s14 = int_to_ptr.hbm [resolvable:$true] %s497_s14 }
  0x2f   : > { %s1846_s6 = sshra.s32 %s498_s14, 4  ;;  %s1847_s6 = int_to_ptr.hbm [resolvable:$true] %s1846_s6 }
  0x30   : > { %s1848_s10 = scalar_lea.hbm %s1847_s6, 8  ;;  %p1854_p11 = scmp.lt.s32.totalorder %s1847_s6, %s2430_s20 }
  0x31   : > { %p1849_p8 = scmp.ne.s32.totalorder %s1847_s6, %s1848_s10  ;;  %p1855_p0 = scmp.lt.s32.totalorder %s1853_s18, %s1848_s10 }
  0x33   : > { %p1851_p10 = pnand %p1850_p9, %p1849_p8  ;;  %p1856_p2 = por %p1855_p0, %p1854_p11 }
  0x35   : > { %p1852_p13 = pneg %p1851_p10 }
  0x37   : > { %p1857_p5 = pnand %p1856_p2, %p1852_p13 }
  0x39   : > { %1860 = shalt.err (!%p1857_p5)
}
  0x3a   : > { %1674 = dma.hbm_to_vmem [thread:$0]  (!%p2130_p7), %s498_s14, 128, %s500_s15, %s488_s23  }
  0x3b   : > { %516 = sbr.rel (%p2076_p3) target bundleno = 2648 (0xa58), region = 84  ;;  %s2147_s0 = sand.u32 (!%p2076_p3), 1, %s1938_s22  }
  0x3c   : > { %s1604_s26 = sshll.u32 (!%p2076_p3), %s2147_s0, 3  ;;  %s519_s30 = scalar_lea.sflag (!%p2076_p3), [#allocation3], %s2147_s0 }
  0x3d   : > { %s522_s19 = scalar_lea.vmem (!%p2076_p3), [#allocation2], %s1604_s26 }
  0x40   : > { %1921 = dma.done.wait (%p2109_p12), %s519_s30, 128  }
  0x41   : > { %1923 = vsyncadd (%p2109_p12), %s519_s30, 4294967168 }
  0x42   : > { %1925 = dma.done.wait (%p54_p1), [#allocation6], 1024  }
  0x43   : > { %1927 = vsyncadd (%p54_p1), [#allocation6], 4294966272  ;;  %p587_p3 = scmp.lt.s32.totalorder %s2071_s28, 1  ;;  %v636_v0 = vld [vmem:[%s2389_s4 + $0x18] sm:$0xff]  ;;  %v635_v1 = vld [vmem:[%s2389_s4 + $0x10] sm:$0xff]  ;;  %vm603_vm0 = vcmask 261120  }
  0x44   : > { %v598_v2 = vld [vmem:[%s2387_s2 + $0x18] sm:$0xff]  ;;  %656 = vmatpush.msra.mxu1 %v636_v0  ;;  %v597_v3 = vld [vmem:[%s2387_s2 + $0x10] sm:$0xff]  ;;  %v634_v4 = vld [vmem:[%s2389_s4 + $0x8] sm:$0xff]  ;;  %vm672_vm1 = vcmask 64512   ;;  %s1952_s25 = smov 96   ;;  %s1953_s16 = smov 120  }
  0x45   : > { %s588_s14 = scalar_select %p587_p3, %s2071_s28, 1  ;;  %622 = vmatpush.msra.mxu0 %v598_v2  ;;  %v633_v5 = vld [vmem:[%s2389_s4] sm:$0xff]  ;;  %v596_v6 = vld [vmem:[%s2387_s2 + $0x8] sm:$0xff]  ;;  %v664_v61 = vld [vmem:[#allocation5] sm:$0xff] }
  0x46   : > { %657 = vmatpush.msra.mxu1 %v635_v1  ;;  %v592_v7 = vld [vmem:[%s522_s19] sm:$0xff]  ;;  %s1955_s30 = smov 104   ;;  %s1957_s6 = smov 80  }
  0x47   : > { %s1650_s15 = sshll.u32 %s588_s14, 4  ;;  %623 = vmatpush.msra.mxu0 %v597_v3  ;;  %v595_v8 = vld [vmem:[%s2387_s2] sm:$0xff]  ;;  %s1956_s14 = smov 88  }
  0x48   : > { %s591_s26 = scalar_lea.vmem %s2386_s1, %s1650_s15  ;;  %658 = vmatpush.msra.mxu1 %v634_v4  ;;  %v1731_v11 = vld [vmem:[%s2390_s5] ss:$0 sm:$0xff]  ;;  %s1958_s10 = smov 72  }
  0x49   : > { %v2188_v9 = vld [vmem:[%s591_s26] sm:$0xff]  ;;  %624 = vmatpush.msra.mxu0 %v596_v6  ;;  %v2193_v10 = vld [vmem:[%s591_s26 + $0x8] sm:$0xff]  ;;  %s1954_s26 = smov 112   ;;  %s2432_s23 = sld [smem:[#allocation21_spill]] }
  0x4a   : > { %659 = vmatpush.msra.mxu1 %v633_v5  ;;  %v1732_v12 = vld [vmem:[%s2388_s3] ss:$0 sm:$0xff]  ;;  %s1607_s27 = sshll.u32 %s2147_s0, 4  ;;  %s1651_s17 = sshll.u32 %s2071_s28, 4 }
  0x4b   : > { %625 = vmatpush.msra.mxu0 %v595_v8  ;;  %1612 = vmatmul.msk.f32.vlgmr.msra.gmra.mxu1 %vm603_vm0, %v592_v7  ;;  %s2434_s21 = sld [smem:[#allocation23_spill]]  ;;  %s1477_s28 = scalar_lea.sflag [#allocation4], %s2147_s0 }
  0x4c   : > { %1610 = vmatmul.msk.f32.vlgmr.msra.gmra.mxu0 %vm603_vm0, %v2188_v9  ;;  %806 = vmatpush.msrb.mxu1 %v664_v61 }
  0x51   : > { %s2435_s18 = smov %s2434_s21 }
  0x54   : > { %1611 = vmatmul.msk.f32.gmra.mxu0 %vm603_vm0, %v2193_v10 }
  0xc8   : > { %v661_v13 = vpop.f32.mrf.mxu1 }
  0xc9   : > { %v627_v14 = vpop.f32.mrf.mxu0  ;;  %v2203_v15 = vadd.f32 %v1731_v11, %v661_v13 }
  0xca   : > { %v2205_v16 = vadd.f32 %v1732_v12, %v627_v14 }
  0xcb   : > { %753 = vrot.lane.b32.xlu2 %v2203_v15, %s1952_s25  ;;  %1613 = vmatpush.xpose.msk.msra.mxu2 %vm672_vm1, %v2203_v15  ;;  %s1488_s25 = scalar_lea.hbm %s2434_s21, %s1651_s17 }
  0xce   : > { %1614 = vmatmul.msk.f32.vlgmr.msra.gmra.mxu2 %vm672_vm1, %v2205_v16 }
  0xd1   : > { %v630_v17 = vpop.f32.mrf.mxu0 }
  0xd2   : > { %v2212_v18 = vadd.f32 %v1732_v12, %v630_v17 }
  0xd3   : > { %820 = vrot.lane.b32.xlu2 %v2203_v15, %s1953_s16 }
  0xd6   : > { %1615 = vmatmul.msk.f32.gmra.mxu2 %vm672_vm1, %v2212_v18 }
 0x125   : > { %v754_v19 = vpop.permute.xlu2 %753 }
 0x126   : > { %777 = vmatpush.msra.mxu3 %v754_v19 }
 0x12d   : > { %v821_v20 = vpop.permute.xlu2 %820 }
 0x12e   : > { %1620 = vmatpush.xpose.msk.msrb.mxu3 %vm672_vm1, %v821_v20  ;;  %v665_v20 = vld [vmem:[#allocation5 + $0x8] sm:$0xff] }
 0x12f   : > { %952 = vmatpush.msrb.mxu0 %v665_v20 }
 0x151   : > { %v699_v21 = vpop.f32.mrf.mxu2 }
 0x152   : > { %v705_v22 = vsel %vm672_vm1, %v699_v21, -inf }
 0x153   : > { %706 = vmax.xlane.f32.xlu0 %v705_v22 }
 0x159   : > { %v702_v23 = vpop.f32.mrf.mxu2 }
 0x15a   : > { %v708_v24 = vsel %vm672_vm1, %v702_v23, -inf }
 0x15b   : > { %709 = vmax.xlane.f32.xlu0 %v708_v24 }
 0x16f   : > { %816 = vrot.lane.b32.xlu0 %v2205_v16, %s1953_s16 }
 0x1c6   : > { %v707_v25 = vpop.xlane.xlu0 %706 }
 0x1c7   : > { %v711_v26 = vsub.f32 %v699_v21, %v707_v25 }
 0x1c9   : > { %v713_v27 = vmul.f32 1.442695, %v711_v26 }
 0x1cb   : > { %1740 = vpow2.f32 %v713_v27 }
 0x1ce   : > { %v710_v28 = vpop.xlane.xlu0 %709 }
 0x1cf   : > { %v712_v29 = vsub.f32 %v702_v23, %v710_v28 }
 0x1d1   : > { %v1741_v30 = vpop.eup %1740  ;;  %v715_v31 = vmul.f32 1.442695, %v712_v29 }
 0x1d2   : > { %v717_v32 = vsel %vm672_vm1, %v1741_v30, 0.0 }
 0x1d3   : > { %1742 = vpow2.f32 %v715_v31  ;;  %718 = vadd.xlane.f32.xlu1 %v717_v32 }
 0x1d9   : > { %v1743_v33 = vpop.eup %1742 }
 0x1da   : > { %v720_v34 = vsel %vm672_vm1, %v1743_v33, 0.0 }
 0x1db   : > { %721 = vadd.xlane.f32.xlu1 %v720_v34 }
 0x1e1   : > { %v817_v59 = vpop.permute.xlu0 %816 }
 0x1f4   : > { %818 = vrot.lane.b32.xlu1 %v2212_v18, %s1953_s16  ;;  %s586_s16 = scalar_lea.vmem [#allocation8], %s1607_s27  ;;  %s1896_s27 = scalar_lea.hbm %s2435_s18, 32 }
 0x246   : > { %v719_v35 = vpop.xlane.xlu1 %718 }
 0x247   : > { %1744 = vrcp.f32 %v719_v35  ;;  %v734_v40 = vand.u32 2147483648, %v719_v35  ;;  %v732_v42 = vand.u32 2147483647, %v719_v35  ;;  %vm728_vm3 = vweird.f32 %v719_v35 }
 0x249   : > { %v735_v45 = vor.u32 1.1754944e-38, %v734_v40  ;;  %vm733_vm5 = vcmp.eq.f32.partialorder %v732_v42, 8.507059e+37 }
 0x24d   : > { %v1745_v36 = vpop.eup %1744 }
 0x24e   : > { %v724_v37 = vmul.f32 %v1745_v36, %v719_v35  ;;  %v722_v38 = vpop.xlane.xlu1 %721  ;;  %vm729_vm2 = vweird.f32 %v1745_v36 }
 0x24f   : > { %1746 = vrcp.f32 %v722_v38  ;;  %vm730_vm4 = vmor %vm728_vm3, %vm729_vm2  ;;  %v749_v51 = vand.u32 2147483648, %v722_v38  ;;  %v747_v53 = vand.u32 2147483647, %v722_v38  ;;  %vm743_vm7 = vweird.f32 %v722_v38 }
 0x250   : > { %v725_v39 = vsub.f32 1.0, %v724_v37 }
 0x251   : > { %v750_v55 = vor.u32 1.1754944e-38, %v749_v51  ;;  %vm748_vm9 = vcmp.eq.f32.partialorder %v747_v53, 8.507059e+37 }
 0x252   : > { %v726_v41 = vmul.f32 %v1745_v36, %v725_v39 }
 0x254   : > { %v727_v43 = vadd.f32 %v1745_v36, %v726_v41 }
 0x255   : > { %v1747_v44 = vpop.eup %1746 }
 0x256   : > { %v739_v46 = vmul.f32 %v1747_v44, %v722_v38  ;;  %v731_v47 = vsel %vm730_vm4, %v1745_v36, %v727_v43  ;;  %vm744_vm6 = vweird.f32 %v1747_v44 }
 0x257   : > { %v736_v48 = vsel %vm733_vm5, %v735_v45, %v731_v47  ;;  %vm745_vm8 = vmor %vm743_vm7, %vm744_vm6 }
 0x258   : > { %v740_v49 = vsub.f32 1.0, %v739_v46  ;;  %v737_v50 = vmul.f32 %v1741_v30, %v736_v48 }
 0x25a   : > { %v741_v52 = vmul.f32 %v1747_v44, %v740_v49  ;;  %1616 = vmatmul.msk.f32.vlgmr.msra.gmra.mxu3 %vm672_vm1, %v737_v50 }
 0x25c   : > { %v742_v54 = vadd.f32 %v1747_v44, %v741_v52 }
 0x25e   : > { %v746_v56 = vsel %vm745_vm8, %v1747_v44, %v742_v54 }
 0x25f   : > { %v751_v57 = vsel %vm748_vm9, %v750_v55, %v746_v56 }
 0x260   : > { %v752_v58 = vmul.f32 %v1743_v33, %v751_v57 }
 0x262   : > { %1617 = vmatmul.msk.f32.gmra.mxu3 %vm672_vm1, %v752_v58 }
 0x266   : > { %v819_v60 = vpop.permute.xlu1 %818 }
 0x26a   : > { %1621 = vmatmul.msk.f32.vlgmr.msrb.gmra.mxu3 %vm672_vm1, %v817_v59 }
 0x272   : > { %1622 = vmatmul.msk.f32.gmra.mxu3 %vm672_vm1, %v819_v60  ;;  %v2258_v60 = vld [vmem:[%s2392_s7] ss:$0 sm:$0xff] }
 0x2dd   : > { %v779_v62 = vpop.f32.mrf.mxu3 }
 0x2de   : > { %1618 = vmatmul.msk.f32.vlgmr.msrb.gmra.mxu1 %vm672_vm1, %v779_v62 }
 0x2e5   : > { %v782_v63 = vpop.f32.mrf.mxu3 }
 0x2e6   : > { %1619 = vmatmul.msk.f32.gmra.mxu1 %vm672_vm1, %v782_v63 }
 0x2ed   : > { %v845_v0 = vpop.f32.mrf.mxu3 }
 0x2ee   : > { %v851_v1 = vsel %vm672_vm1, %v845_v0, -inf }
 0x2ef   : > { %852 = vmax.xlane.f32.xlu2 %v851_v1 }
 0x2f5   : > { %v848_v2 = vpop.f32.mrf.mxu3 }
 0x2f6   : > { %v854_v3 = vsel %vm672_vm1, %v848_v2, -inf }
 0x2f7   : > { %855 = vmax.xlane.f32.xlu0 %v854_v3 }
 0x30b   : > { %966 = vrot.lane.b32.xlu0 %v2203_v15, %s1954_s26 }
 0x313   : > { %1108 = vrot.lane.b32.xlu0 %v2205_v16, %s1955_s30 }
 0x35b   : > { %v808_v47 = vpop.f32.mrf.mxu1 }
 0x35c   : > { %v814_v61 = vadd.f32 %v2258_v60, %v808_v47 }
 0x362   : > { %v853_v4 = vpop.xlane.xlu2 %852 }
 0x363   : > { %v857_v5 = vsub.f32 %v845_v0, %v853_v4  ;;  %v2247_v48 = vpop.f32.mrf.mxu1 }
 0x365   : > { %v859_v6 = vmul.f32 1.442695, %v857_v5 }
 0x367   : > { %1748 = vpow2.f32 %v859_v6 }
 0x36a   : > { %v856_v7 = vpop.xlane.xlu0 %855 }
 0x36b   : > { %v858_v8 = vsub.f32 %v848_v2, %v856_v7 }
 0x36d   : > { %v1749_v11 = vpop.eup %1748  ;;  %v861_v12 = vmul.f32 1.442695, %v858_v8 }
 0x36e   : > { %v863_v13 = vsel %vm672_vm1, %v1749_v11, 0.0 }
 0x36f   : > { %1750 = vpow2.f32 %v861_v12  ;;  %864 = vadd.xlane.f32.xlu1 %v863_v13 }
 0x375   : > { %v1751_v14 = vpop.eup %1750 }
 0x376   : > { %v866_v17 = vsel %vm672_vm1, %v1751_v14, 0.0 }
 0x377   : > { %867 = vadd.xlane.f32.xlu2 %v866_v17 }
 0x37d   : > { %v967_v19 = vpop.permute.xlu0 %966 }
 0x37e   : > { %1627 = vmatpush.xpose.msk.msra.mxu1 %vm672_vm1, %v967_v19 }
 0x385   : > { %v1109_v55 = vpop.permute.xlu0 %1108 }
 0x388   : > { %962 = vrot.lane.b32.xlu1 %v2205_v16, %s1954_s26 }
 0x38f   : > { %899 = vrot.lane.b32.xlu2 %v2203_v15, %s1956_s14  ;;  %s1491_s14 = sshll.u32 %s1488_s25, 4  ;;  %s1492_s14 = int_to_ptr.hbm [resolvable:$true] %s1491_s14 }
 0x397   : > { %1112 = vrot.lane.b32.xlu2 %v2203_v15, %s1955_s30 }
 0x39f   : > { %964 = vrot.lane.b32.xlu2 %v2212_v18, %s1954_s26 }
 0x3a7   : > { %1110 = vrot.lane.b32.xlu2 %v2212_v18, %s1955_s30  ;;  %s1489_s30 = sshll.u32 %s586_s16, 4  ;;  %s1490_s30 = int_to_ptr.vmem [resolvable:$true] %s1489_s30 }
 0x3e2   : > { %v865_v21 = vpop.xlane.xlu1 %864 }
 0x3e3   : > { %1752 = vrcp.f32 %v865_v21  ;;  %v880_v26 = vand.u32 2147483648, %v865_v21  ;;  %v878_v27 = vand.u32 2147483647, %v865_v21  ;;  %vm874_vm11 = vweird.f32 %v865_v21 }
 0x3e5   : > { %v881_v30 = vor.u32 1.1754944e-38, %v880_v26  ;;  %vm879_vm13 = vcmp.eq.f32.partialorder %v878_v27, 8.507059e+37 }
 0x3e9   : > { %v1753_v22 = vpop.eup %1752 }
 0x3ea   : > { %v870_v23 = vmul.f32 %v1753_v22, %v865_v21  ;;  %v868_v24 = vpop.xlane.xlu2 %867  ;;  %vm875_vm10 = vweird.f32 %v1753_v22 }
 0x3eb   : > { %1754 = vrcp.f32 %v868_v24  ;;  %vm876_vm12 = vmor %vm874_vm11, %vm875_vm10  ;;  %v895_v36 = vand.u32 2147483648, %v868_v24  ;;  %v893_v38 = vand.u32 2147483647, %v868_v24  ;;  %vm889_vm15 = vweird.f32 %v868_v24 }
 0x3ec   : > { %v871_v25 = vsub.f32 1.0, %v870_v23 }
 0x3ed   : > { %v896_v40 = vor.u32 1.1754944e-38, %v895_v36  ;;  %vm894_vm3 = vcmp.eq.f32.partialorder %v893_v38, 8.507059e+37 }
 0x3ee   : > { %v872_v16 = vmul.f32 %v1753_v22, %v871_v25 }
 0x3f0   : > { %v873_v28 = vadd.f32 %v1753_v22, %v872_v16 }
 0x3f1   : > { %v1755_v29 = vpop.eup %1754 }
 0x3f2   : > { %v885_v18 = vmul.f32 %v1755_v29, %v868_v24  ;;  %v900_v31 = vpop.permute.xlu2 %899  ;;  %v877_v32 = vsel %vm876_vm12, %v1753_v22, %v873_v28  ;;  %vm890_vm14 = vweird.f32 %v1755_v29 }
 0x3f3   : > { %923 = vmatpush.msrb.mxu2 %v900_v31  ;;  %v882_v33 = vsel %vm879_vm13, %v881_v30, %v877_v32  ;;  %vm891_vm2 = vmor %vm889_vm15, %vm890_vm14 }
 0x3f4   : > { %v886_v34 = vsub.f32 1.0, %v885_v18  ;;  %v883_v35 = vmul.f32 %v1749_v11, %v882_v33 }
 0x3f6   : > { %v887_v37 = vmul.f32 %v1755_v29, %v886_v34  ;;  %1623 = vmatmul.msk.f32.vlgmr.msrb.gmra.mxu2 %vm672_vm1, %v883_v35 }
 0x3f8   : > { %v888_v39 = vadd.f32 %v1755_v29, %v887_v37 }
 0x3fa   : > { %v963_v41 = vpop.permute.xlu1 %962  ;;  %v1113_v42 = vpop.permute.xlu2 %1112  ;;  %v892_v43 = vsel %vm891_vm2, %v1755_v29, %v888_v39 }
 0x3fb   : > { %1628 = vmatmul.msk.f32.vlgmr.msra.gmra.mxu1 %vm672_vm1, %v963_v41  ;;  %1634 = vmatpush.xpose.msk.msra.mxu0 %vm672_vm1, %v1113_v42  ;;  %v897_v44 = vsel %vm894_vm3, %v896_v40, %v892_v43 }
 0x3fc   : > { %v898_v45 = vmul.f32 %v1751_v14, %v897_v44 }
 0x3fe   : > { %1624 = vmatmul.msk.f32.gmra.mxu2 %vm672_vm1, %v898_v45 }
 0x402   : > { %v965_v46 = vpop.permute.xlu2 %964 }
 0x403   : > { %1629 = vmatmul.msk.f32.gmra.mxu1 %vm672_vm1, %v965_v46 }
 0x40a   : > { %v1111_v56 = vpop.permute.xlu2 %1110 }
 0x478   : > { %v991_v49 = vpop.f32.mrf.mxu1 }
 0x479   : > { %v925_v50 = vpop.f32.mrf.mxu2  ;;  %v997_v51 = vsel %vm672_vm1, %v991_v49, -inf }
 0x47a   : > { %1625 = vmatmul.msk.f32.vlgmr.msrb.gmra.mxu0 %vm672_vm1, %v925_v50  ;;  %998 = vmax.xlane.f32.xlu0 %v997_v51  ;;  %v666_v51 = vld [vmem:[#allocation5 + $0x10] sm:$0xff] }
 0x47b   : > { %1098 = vmatpush.msra.mxu2 %v666_v51  ;;  %v1320_v51 = vld [vmem:[#allocation7 + $0x8] sm:$0xff] }
 0x480   : > { %v994_v52 = vpop.f32.mrf.mxu1 }
 0x481   : > { %v928_v53 = vpop.f32.mrf.mxu2  ;;  %v1000_v54 = vsel %vm672_vm1, %v994_v52, -inf }
 0x482   : > { %1626 = vmatmul.msk.f32.gmra.mxu0 %vm672_vm1, %v928_v53  ;;  %1001 = vmax.xlane.f32.xlu1 %v1000_v54 }
 0x48a   : > { %1635 = vmatmul.msk.f32.vlgmr.msra.gmra.mxu0 %vm672_vm1, %v1109_v55 }
 0x492   : > { %1636 = vmatmul.msk.f32.gmra.mxu0 %vm672_vm1, %v1111_v56 }
 0x4ed   : > { %v999_v57 = vpop.xlane.xlu0 %998 }
 0x4ee   : > { %v1003_v58 = vsub.f32 %v991_v49, %v999_v57 }
 0x4f0   : > { %v1005_v59 = vmul.f32 1.442695, %v1003_v58 }
 0x4f2   : > { %1756 = vpow2.f32 %v1005_v59 }
 0x4f5   : > { %v1002_v2 = vpop.xlane.xlu1 %1001 }
 0x4f6   : > { %v1004_v3 = vsub.f32 %v994_v52, %v1002_v2 }
 0x4f7   : > { %v954_v62 = vpop.f32.mrf.mxu0 }
 0x4f8   : > { %v1757_v63 = vpop.eup %1756  ;;  %v2261_v0 = vadd.f32 %v954_v62, %v814_v61  ;;  %v1007_v5 = vmul.f32 1.442695, %v1004_v3 }
 0x4f9   : > { %v1009_v1 = vsel %vm672_vm1, %v1757_v63, 0.0 }
 0x4fa   : > { %1010 = vadd.xlane.f32.xlu1 %v1009_v1  ;;  %1758 = vpow2.f32 %v1007_v5 }
 0x4ff   : > { %v2264_v4 = vpop.f32.mrf.mxu0 }
 0x500   : > { %v1759_v8 = vpop.eup %1758 }
 0x501   : > { %v1012_v12 = vsel %vm672_vm1, %v1759_v8, 0.0 }
 0x507   : > { %v1137_v6 = vpop.f32.mrf.mxu0 }
 0x508   : > { %v1143_v7 = vsel %vm672_vm1, %v1137_v6, -inf }
 0x509   : > { %1144 = vmax.xlane.f32.xlu2 %v1143_v7 }
 0x50f   : > { %v1140_v11 = vpop.f32.mrf.mxu0 }
 0x510   : > { %v1146_v13 = vsel %vm672_vm1, %v1140_v11, -inf }
 0x511   : > { %1013 = vadd.xlane.f32.xlu2 %v1012_v12  ;;  %1147 = vmax.xlane.f32.xlu0 %v1146_v13 }
 0x529   : > { %1045 = vrot.lane.b32.xlu2 %v2203_v15, %s1957_s6 }
 0x56d   : > { %v1011_v14 = vpop.xlane.xlu1 %1010 }
 0x56e   : > { %1760 = vrcp.f32 %v1011_v14  ;;  %v1026_v26 = vand.u32 2147483648, %v1011_v14  ;;  %vm1020_vm5 = vweird.f32 %v1011_v14  ;;  %v1024_v16 = vand.u32 2147483647, %v1011_v14 }
 0x570   : > { %v1027_v31 = vor.u32 1.1754944e-38, %v1026_v26  ;;  %vm1025_vm7 = vcmp.eq.f32.partialorder %v1024_v16, 8.507059e+37 }
 0x574   : > { %v1761_v17 = vpop.eup %1760 }
 0x575   : > { %v1016_v19 = vmul.f32 %v1761_v17, %v1011_v14  ;;  %vm1021_vm4 = vweird.f32 %v1761_v17 }
 0x576   : > { %vm1022_vm6 = vmor %vm1020_vm5, %vm1021_vm4 }
 0x577   : > { %v1017_v20 = vsub.f32 1.0, %v1016_v19 }
 0x579   : > { %v1018_v23 = vmul.f32 %v1761_v17, %v1017_v20 }
 0x57b   : > { %v1019_v25 = vadd.f32 %v1761_v17, %v1018_v23 }
 0x57c   : > { %v1145_v21 = vpop.xlane.xlu2 %1144 }
 0x57d   : > { %v1149_v22 = vsub.f32 %v1137_v6, %v1145_v21  ;;  %v1023_v30 = vsel %vm1022_vm6, %v1761_v17, %v1019_v25 }
 0x57e   : > { %v1028_v34 = vsel %vm1025_vm7, %v1027_v31, %v1023_v30 }
 0x57f   : > { %v1151_v24 = vmul.f32 1.442695, %v1149_v22  ;;  %v1029_v38 = vmul.f32 %v1757_v63, %v1028_v34  ;;  %v667_v22 = vld [vmem:[#allocation5 + $0x18] sm:$0xff] }
 0x581   : > { %1762 = vpow2.f32 %v1151_v24 }
 0x584   : > { %v1014_v27 = vpop.xlane.xlu2 %1013  ;;  %v1148_v28 = vpop.xlane.xlu0 %1147 }
 0x585   : > { %1764 = vrcp.f32 %v1014_v27  ;;  %v1150_v29 = vsub.f32 %v1140_v11, %v1148_v28  ;;  %v1041_v41 = vand.u32 2147483648, %v1014_v27  ;;  %v1039_v44 = vand.u32 2147483647, %v1014_v27 }
 0x586   : > { %vm1035_vm9 = vweird.f32 %v1014_v27  ;;  %v815_v28 = vadd.f32 %v2258_v60, %v2247_v48 }
 0x587   : > { %v1763_v18 = vpop.eup %1762  ;;  %v1153_v32 = vmul.f32 1.442695, %v1150_v29  ;;  %v1042_v46 = vor.u32 1.1754944e-38, %v1041_v41  ;;  %vm1040_vm11 = vcmp.eq.f32.partialorder %v1039_v44, 8.507059e+37 }
 0x588   : > { %v1155_v33 = vsel %vm672_vm1, %v1763_v18, 0.0 }
 0x589   : > { %1766 = vpow2.f32 %v1153_v32  ;;  %1156 = vadd.xlane.f32.xlu0 %v1155_v33 }
 0x58b   : > { %v1765_v35 = vpop.eup %1764 }
 0x58c   : > { %v1031_v36 = vmul.f32 %v1765_v35, %v1014_v27  ;;  %v1046_v37 = vpop.permute.xlu2 %1045  ;;  %vm1036_vm8 = vweird.f32 %v1765_v35 }
 0x58d   : > { %1069 = vmatpush.msra.mxu3 %v1046_v37  ;;  %vm1037_vm10 = vmor %vm1035_vm9, %vm1036_vm8 }
 0x58e   : > { %v1032_v39 = vsub.f32 1.0, %v1031_v36  ;;  %1630 = vmatmul.msk.f32.vlgmr.msra.gmra.mxu3 %vm672_vm1, %v1029_v38  ;;  %v1959_v36 = vmov 32.0  }
 0x58f   : > { %v1767_v40 = vpop.eup %1766  ;;  %1244 = vmatpush.msrb.mxu3 %v667_v22 }
 0x590   : > { %v1033_v42 = vmul.f32 %v1765_v35, %v1032_v39  ;;  %v1158_v43 = vsel %vm672_vm1, %v1767_v40, 0.0 }
 0x591   : > { %1159 = vadd.xlane.f32.xlu1 %v1158_v43 }
 0x592   : > { %v1034_v45 = vadd.f32 %v1765_v35, %v1033_v42 }
 0x594   : > { %v1038_v47 = vsel %vm1037_vm10, %v1765_v35, %v1034_v45 }
 0x595   : > { %v1043_v49 = vsel %vm1040_vm11, %v1042_v46, %v1038_v47 }
 0x596   : > { %v1044_v50 = vmul.f32 %v1759_v8, %v1043_v49  ;;  %v1322_v49 = vld [vmem:[#allocation7 + $0x18] sm:$0xff] }
 0x597   : > { %1345 = vmatpush.msrb.mxu2 %v1322_v49  ;;  %v1737_v49 = vld [vmem:[%s2398_s13] ss:$0 sm:$0xff] }
 0x598   : > { %1631 = vmatmul.msk.f32.gmra.mxu3 %vm672_vm1, %v1044_v50  ;;  %v1321_v50 = vld [vmem:[#allocation7 + $0x10] sm:$0xff] }
 0x599   : > { %1346 = vmatpush.msrb.mxu2 %v1321_v50 }
 0x59b   : > { %1347 = vmatpush.msrb.mxu2 %v1320_v51 }
 0x59d   : > { %1191 = vrot.lane.b32.xlu0 %v2203_v15, %s1958_s10  ;;  %s2433_s10 = sld [smem:[#allocation22_spill]] }
 0x5fc   : > { %v1157_v52 = vpop.xlane.xlu0 %1156 }
 0x5fd   : > { %1768 = vrcp.f32 %v1157_v52  ;;  %v1172_v57 = vand.u32 2147483648, %v1157_v52  ;;  %v1170_v59 = vand.u32 2147483647, %v1157_v52  ;;  %vm1166_vm13 = vweird.f32 %v1157_v52 }
 0x5ff   : > { %v1173_v63 = vor.u32 1.1754944e-38, %v1172_v57  ;;  %vm1171_vm15 = vcmp.eq.f32.partialorder %v1170_v59, 8.507059e+37 }
 0x603   : > { %v1769_v53 = vpop.eup %1768 }
 0x604   : > { %v1162_v54 = vmul.f32 %v1769_v53, %v1157_v52  ;;  %v1160_v55 = vpop.xlane.xlu1 %1159  ;;  %vm1167_vm12 = vweird.f32 %v1769_v53  ;;  %v1319_v52 = vld [vmem:[#allocation7] sm:$0xff] }
 0x605   : > { %1770 = vrcp.f32 %v1160_v55  ;;  %vm1168_vm14 = vmor %vm1166_vm13, %vm1167_vm12  ;;  %v1187_v6 = vand.u32 2147483648, %v1160_v55  ;;  %v1185_v11 = vand.u32 2147483647, %v1160_v55  ;;  %vm1181_vm3 = vweird.f32 %v1160_v55  ;;  %1348 = vmatpush.msrb.mxu2 %v1319_v52 }
 0x606   : > { %v1163_v56 = vsub.f32 1.0, %v1162_v54  ;;  %1772 = vrcp.f32 %v1959_v36  ;;  %vm1386_vm12 = vcmask 523264  }
 0x607   : > { %v1188_v14 = vor.u32 1.1754944e-38, %v1187_v6  ;;  %vm1186_vm5 = vcmp.eq.f32.partialorder %v1185_v11, 8.507059e+37  ;;  %v1735_v11 = vld [vmem:[%s2394_s9] ss:$0 sm:$0xff] }
 0x608   : > { %v1164_v58 = vmul.f32 %v1769_v53, %v1163_v56 }
 0x60a   : > { %v1165_v61 = vadd.f32 %v1769_v53, %v1164_v58 }
 0x60b   : > { %v1771_v62 = vpop.eup %1770 }
 0x60c   : > { %v1169_v1 = vsel %vm1168_vm14, %v1769_v53, %v1165_v61  ;;  %v1177_v15 = vmul.f32 %v1771_v62, %v1160_v55  ;;  %vm1182_vm2 = vweird.f32 %v1771_v62  ;;  %v1773_v37 = vpop.eup %1772 }
 0x60d   : > { %v1174_v2 = vsel %vm1171_vm15, %v1173_v63, %v1169_v1  ;;  %vm1183_vm4 = vmor %vm1181_vm3, %vm1182_vm2  ;;  %v1265_v48 = vmul.f32 32.0, %v1773_v37 }
 0x60e   : > { %v1178_v3 = vsub.f32 1.0, %v1177_v15  ;;  %v1175_v5 = vmul.f32 %v1763_v18, %v1174_v2  ;;  %v961_v18 = vadd.f32 %v2264_v4, %v815_v28  ;;  %v1376_v28 = vld [vmem:[%s2397_s12 + $0x10] sm:$0xff] }
 0x60f   : > { %v1192_v7 = vpop.permute.xlu0 %1191  ;;  %v1266_v60 = vsub.f32 1.0, %v1265_v48 }
 0x610   : > { %v1179_v8 = vmul.f32 %v1771_v62, %v1178_v3  ;;  %1215 = vmatpush.msrb.mxu1 %v1192_v7 }
 0x611   : > { %v1071_v12 = vpop.f32.mrf.mxu3  ;;  %1637 = vmatmul.msk.f32.vlgmr.msrb.gmra.mxu1 %vm672_vm1, %v1175_v5  ;;  %v1734_v5 = vld [vmem:[%s2393_s8] ss:$0 sm:$0xff] }
 0x612   : > { %1632 = vmatmul.msk.f32.vlgmr.msra.gmra.mxu2 %vm672_vm1, %v1071_v12  ;;  %v1180_v13 = vadd.f32 %v1771_v62, %v1179_v8 }
 0x614   : > { %v1184_v17 = vsel %vm1183_vm4, %v1771_v62, %v1180_v13 }
 0x615   : > { %v1189_v19 = vsel %vm1186_vm5, %v1188_v14, %v1184_v17 }
 0x616   : > { %v1190_v20 = vmul.f32 %v1767_v40, %v1189_v19 }
 0x619   : > { %1638 = vmatmul.msk.f32.gmra.mxu1 %vm672_vm1, %v1190_v20 }
 0x61b   : > { %v1074_v21 = vpop.f32.mrf.mxu3 }
 0x61c   : > { %1633 = vmatmul.msk.f32.gmra.mxu2 %vm672_vm1, %v1074_v21 }
 0x68e   : > { %v1217_v23 = vpop.f32.mrf.mxu1 }
 0x68f   : > { %1639 = vmatmul.msk.f32.vlgmr.msrb.gmra.mxu3 %vm672_vm1, %v1217_v23 }
 0x695   : > { %v1100_v25 = vpop.f32.mrf.mxu2 }
 0x696   : > { %v1220_v24 = vpop.f32.mrf.mxu1  ;;  %v1106_v26 = vadd.f32 %v1100_v25, %v2261_v0  ;;  %v1380_v25 = vld [vmem:[%s2397_s12 + $0x30] sm:$0xff] }
 0x697   : > { %1640 = vmatmul.msk.f32.gmra.mxu3 %vm672_vm1, %v1220_v24  ;;  %vm1269_vm1 = vweird.f32 %v1773_v37  ;;  %v1381_v24 = vld [vmem:[%s2397_s12 + $0x38] sm:$0xff] }
 0x698   : > { %1401 = vmatpush.msrb.mxu0 %v1381_v24 }
 0x69a   : > { %1402 = vmatpush.msrb.mxu0 %v1380_v25  ;;  %v1738_v25 = vld [vmem:[%s2432_s23] ss:$0 sm:$0xff]  ;;  %s1890_s23 = sshra.s32 %s1492_s14, 4  ;;  %s1891_s23 = int_to_ptr.hbm [resolvable:$true] %s1890_s23 }
 0x69b   : > { %s1892_s29 = scalar_lea.hbm %s1891_s23, 16  ;;  %p1897_p7 = scmp.lt.s32.totalorder %s1891_s23, %s2435_s18 }
 0x69c   : > { %p1893_p1 = scmp.ne.s32.totalorder %s1891_s23, %s1892_s29  ;;  %p1898_p8 = scmp.lt.s32.totalorder %s1896_s27, %s1892_s29 }
 0x69e   : > { %p1894_p5 = pnand %p1893_p1, %p2116_p4  ;;  %p1899_p9 = por %p1898_p8, %p1897_p7 }
 0x69f   : > { %v1103_v30 = vpop.f32.mrf.mxu2 }
 0x6a0   : > { %v1107_v32 = vadd.f32 %v1103_v30, %v961_v18  ;;  %v1374_v30 = vld [vmem:[%s2397_s12] sm:$0xff]  ;;  %p1895_p12 = pneg %p1894_p5 }
 0x6a1   : > { %v1736_v18 = vld [vmem:[%s2396_s11] ss:$0 sm:$0xff] }
 0x6a2   : > { %p1900_p10 = pnand %p1899_p9, %p1895_p12 }
 0x712   : > { %v1246_v16 = vpop.f32.mrf.mxu3 }
 0x713   : > { %v1252_v27 = vadd.f32 %v1246_v16, %v1106_v26  ;;  %v1379_v26 = vld [vmem:[%s2397_s12 + $0x28] sm:$0xff]  ;;  %v1378_v16 = vld [vmem:[%s2397_s12 + $0x20] sm:$0xff] }
 0x714   : > { %1403 = vmatpush.msrb.mxu0 %v1379_v26 }
 0x715   : > { %v1254_v29 = vadd.f32 %v1252_v27, %v2188_v9  ;;  %v1267_v9 = vmul.f32 %v1773_v37, %v1266_v60  ;;  %v1377_v27 = vld [vmem:[%s2397_s12 + $0x18] sm:$0xff] }
 0x716   : > { %1404 = vmatpush.msrb.mxu0 %v1378_v16  ;;  %v1739_v16 = vld [vmem:[%s2433_s10] ss:$0 sm:$0xff] }
 0x717   : > { %v1258_v31 = vsel %vm603_vm0, %v1254_v29, 0.0  ;;  %v1268_v38 = vadd.f32 %v1773_v37, %v1267_v9 }
 0x718   : > { %1259 = vadd.xlane.f32.xlu1 %v1258_v31  ;;  %1405 = vmatpush.msrb.mxu0 %v1377_v27 }
 0x719   : > { %v2289_v4 = vsel %vm1269_vm1, %v1773_v37, %v1268_v38 }
 0x71a   : > { %v1249_v33 = vpop.f32.mrf.mxu3  ;;  %1406 = vmatpush.msrb.mxu0 %v1376_v28 }
 0x71b   : > { %v1253_v34 = vadd.f32 %v1249_v33, %v1107_v32 }
 0x71d   : > { %v1255_v35 = vadd.f32 %v1253_v34, %v2193_v10 }
 0x71f   : > { %v1261_v0 = vsel %vm603_vm0, %v1255_v35, 0.0 }
 0x720   : > { %1262 = vadd.xlane.f32.xlu1 %v1261_v0 }
 0x78b   : > { %v1260_v39 = vpop.xlane.xlu1 %1259 }
 0x78c   : > { %v1271_v40 = vmul.f32 %v2289_v4, %v1260_v39 }
 0x78e   : > { %v1273_v41 = vsub.f32 %v1254_v29, %v1271_v40  ;;  %v1375_v29 = vld [vmem:[%s2397_s12 + $0x8] sm:$0xff] }
 0x78f   : > { %1407 = vmatpush.msrb.mxu0 %v1375_v29 }
 0x790   : > { %v1275_v42 = vmul.f32 %v1273_v41, %v1273_v41 }
 0x791   : > { %1408 = vmatpush.msrb.mxu0 %v1374_v30 }
 0x792   : > { %v1277_v10 = vsel %vm603_vm0, %v1275_v42, 0.0 }
 0x793   : > { %1278 = vadd.xlane.f32.xlu1 %v1277_v10  ;;  %v1263_v43 = vpop.xlane.xlu1 %1262 }
 0x794   : > { %v1272_v44 = vmul.f32 %v2289_v4, %v1263_v43 }
 0x796   : > { %v1274_v45 = vsub.f32 %v1255_v35, %v1272_v44 }
 0x798   : > { %v1276_v46 = vmul.f32 %v1274_v45, %v1274_v45 }
 0x79a   : > { %v1280_v47 = vsel %vm603_vm0, %v1276_v46, 0.0 }
 0x79b   : > { %1281 = vadd.xlane.f32.xlu0 %v1280_v47 }
 0x806   : > { %v1279_v53 = vpop.xlane.xlu1 %1278 }
 0x807   : > { %v1283_v54 = vmul.f32 %v1279_v53, %v2289_v4 }
 0x809   : > { %v1285_v55 = vadd.f32 1e-05, %v1283_v54 }
 0x80b   : > { %1774 = vrsqrt.f32 %v1285_v55  ;;  %vm1293_vm7 = vweird.f32 %v1285_v55 }
 0x80e   : > { %v1282_v56 = vpop.xlane.xlu0 %1281 }
 0x80f   : > { %v1284_v57 = vmul.f32 %v1282_v56, %v2289_v4 }
 0x811   : > { %v1775_v58 = vpop.eup %1774  ;;  %v1286_v59 = vadd.f32 1e-05, %v1284_v57 }
 0x812   : > { %v1288_v61 = vmul.f32 %v1775_v58, %v1285_v55  ;;  %vm1294_vm6 = vweird.f32 %v1775_v58 }
 0x813   : > { %1776 = vrsqrt.f32 %v1286_v59  ;;  %vm1295_vm8 = vmor %vm1293_vm7, %vm1294_vm6  ;;  %vm1303_vm10 = vweird.f32 %v1286_v59 }
 0x814   : > { %v1289_v62 = vmul.f32 %v1775_v58, %v1288_v61 }
 0x816   : > { %v1290_v63 = vmul.f32 0.5, %v1289_v62 }
 0x818   : > { %v1291_v1 = vsub.f32 1.5, %v1290_v63 }
 0x819   : > { %v1777_v15 = vpop.eup %1776 }
 0x81a   : > { %v1292_v2 = vmul.f32 %v1775_v58, %v1291_v1  ;;  %v1298_v3 = vmul.f32 %v1777_v15, %v1286_v59  ;;  %vm1304_vm9 = vweird.f32 %v1777_v15 }
 0x81b   : > { %vm1305_vm11 = vmor %vm1303_vm10, %vm1304_vm9 }
 0x81c   : > { %v1296_v6 = vsel %vm1295_vm8, %v1775_v58, %v1292_v2  ;;  %v1299_v7 = vmul.f32 %v1777_v15, %v1298_v3 }
 0x81d   : > { %v1307_v8 = vmul.f32 %v1296_v6, %v1273_v41 }
 0x81e   : > { %v1300_v12 = vmul.f32 0.5, %v1299_v7 }
 0x81f   : > { %v1312_v13 = vmul.f32 %v1734_v5, %v1307_v8 }
 0x820   : > { %v1301_v14 = vsub.f32 1.5, %v1300_v12 }
 0x821   : > { %v1317_v17 = vadd.f32 %v1735_v11, %v1312_v13 }
 0x822   : > { %v1302_v19 = vmul.f32 %v1777_v15, %v1301_v14 }
 0x823   : > { %1641 = vmatmul.msk.f32.vlgmr.msrb.gmra.mxu2 %vm603_vm0, %v1317_v17 }
 0x824   : > { %v1306_v20 = vsel %vm1305_vm11, %v1777_v15, %v1302_v19 }
 0x825   : > { %v1308_v21 = vmul.f32 %v1306_v20, %v1274_v45 }
 0x827   : > { %v1313_v22 = vmul.f32 %v1734_v5, %v1308_v21 }
 0x829   : > { %v1318_v23 = vadd.f32 %v1735_v11, %v1313_v22 }
 0x82b   : > { %1642 = vmatmul.msk.f32.gmra.mxu2 %vm603_vm0, %v1318_v23 }
 0x8a6   : > { %v1350_v31 = vpop.f32.mrf.mxu2 }
 0x8a7   : > { %v1351_v32 = vadd.f32 %v1736_v18, %v1350_v31 }
 0x8a9   : > { %v1358_v33 = vmul.f32 0.044715, %v1351_v32  ;;  %v1356_v42 = vmul.f32 0.5, %v1351_v32 }
 0x8ab   : > { %v1360_v34 = vmul.f32 %v1358_v33, %v1351_v32 }
 0x8ad   : > { %v1362_v35 = vmul.f32 %v1360_v34, %v1351_v32 }
 0x8ae   : > { %v1353_v0 = vpop.f32.mrf.mxu2 }
 0x8af   : > { %v1364_v36 = vadd.f32 %v1362_v35, %v1351_v32  ;;  %v1354_v37 = vadd.f32 %v1736_v18, %v1353_v0 }
 0x8b1   : > { %v1366_v48 = vmul.f32 0.7978846, %v1364_v36  ;;  %v1359_v60 = vmul.f32 0.044715, %v1354_v37  ;;  %v1357_v45 = vmul.f32 0.5, %v1354_v37 }
 0x8b3   : > { %1778 = vtanh.f32 %v1366_v48  ;;  %v1361_v9 = vmul.f32 %v1359_v60, %v1354_v37 }
 0x8b5   : > { %v1363_v38 = vmul.f32 %v1361_v9, %v1354_v37 }
 0x8b7   : > { %v1365_v39 = vadd.f32 %v1363_v38, %v1354_v37 }
 0x8b9   : > { %v1779_v40 = vpop.eup %1778  ;;  %v1367_v41 = vmul.f32 0.7978846, %v1365_v39 }
 0x8ba   : > { %v1370_v10 = vadd.f32 1.0, %v1779_v40 }
 0x8bb   : > { %1780 = vtanh.f32 %v1367_v41 }
 0x8bc   : > { %v1372_v43 = vmul.f32 %v1370_v10, %v1356_v42 }
 0x8be   : > { %1643 = vmatmul.msk.f32.vlgmr.msrb.gmra.mxu0 %vm1386_vm12, %v1372_v43 }
 0x8c1   : > { %v1781_v44 = vpop.eup %1780 }
 0x8c2   : > { %v1371_v46 = vadd.f32 1.0, %v1781_v44 }
 0x8c4   : > { %v1373_v47 = vmul.f32 %v1371_v46, %v1357_v45 }
 0x8c6   : > { %1644 = vmatmul.msk.f32.gmra.mxu0 %vm1386_vm12, %v1373_v47 }
 0x93b   : > { %v1410_v50 = vpop.f32.mrf.mxu0 }
 0x93c   : > { %v1411_v51 = vadd.f32 %v1737_v49, %v1410_v50 }
 0x93e   : > { %v1416_v52 = vadd.f32 %v1411_v51, %v1317_v17 }
 0x940   : > { %v1420_v53 = vsel %vm603_vm0, %v1416_v52, 0.0 }
 0x941   : > { %1421 = vadd.xlane.f32.xlu2 %v1420_v53 }
 0x943   : > { %v1413_v54 = vpop.f32.mrf.mxu0 }
 0x944   : > { %v1414_v55 = vadd.f32 %v1737_v49, %v1413_v54 }
 0x946   : > { %v1417_v56 = vadd.f32 %v1414_v55, %v1318_v23 }
 0x948   : > { %v1423_v57 = vsel %vm603_vm0, %v1417_v56, 0.0 }
 0x949   : > { %1424 = vadd.xlane.f32.xlu1 %v1423_v57 }
 0x9b4   : > { %v1422_v58 = vpop.xlane.xlu2 %1421 }
 0x9b5   : > { %v1426_v59 = vmul.f32 %v1422_v58, %v2289_v4 }
 0x9b7   : > { %v1428_v61 = vsub.f32 %v1416_v52, %v1426_v59 }
 0x9b9   : > { %v1430_v62 = vmul.f32 %v1428_v61, %v1428_v61 }
 0x9bb   : > { %v1432_v63 = vsel %vm603_vm0, %v1430_v62, 0.0 }
 0x9bc   : > { %v1425_v1 = vpop.xlane.xlu1 %1424  ;;  %1433 = vadd.xlane.f32.xlu1 %v1432_v63 }
 0x9bd   : > { %v1427_v15 = vmul.f32 %v1425_v1, %v2289_v4 }
 0x9bf   : > { %v1429_v2 = vsub.f32 %v1417_v56, %v1427_v15 }
 0x9c1   : > { %v1431_v3 = vmul.f32 %v1429_v2, %v1429_v2 }
 0x9c3   : > { %v1435_v5 = vsel %vm603_vm0, %v1431_v3, 0.0 }
 0x9c4   : > { %1436 = vadd.xlane.f32.xlu1 %v1435_v5 }
 0xa2f   : > { %v1434_v6 = vpop.xlane.xlu1 %1433 }
 0xa30   : > { %v1438_v7 = vmul.f32 %v1434_v6, %v2289_v4 }
 0xa32   : > { %v1440_v8 = vadd.f32 1e-05, %v1438_v7 }
 0xa34   : > { %1782 = vrsqrt.f32 %v1440_v8  ;;  %vm1448_vm14 = vweird.f32 %v1440_v8 }
 0xa37   : > { %v1437_v11 = vpop.xlane.xlu1 %1436 }
 0xa38   : > { %v1439_v12 = vmul.f32 %v1437_v11, %v2289_v4 }
 0xa3a   : > { %v1783_v13 = vpop.eup %1782  ;;  %v1441_v14 = vadd.f32 1e-05, %v1439_v12 }
 0xa3b   : > { %v1443_v17 = vmul.f32 %v1783_v13, %v1440_v8  ;;  %vm1449_vm13 = vweird.f32 %v1783_v13 }
 0xa3c   : > { %1784 = vrsqrt.f32 %v1441_v14  ;;  %vm1450_vm15 = vmor %vm1448_vm14, %vm1449_vm13  ;;  %vm1458_vm3 = vweird.f32 %v1441_v14 }
 0xa3d   : > { %v1444_v19 = vmul.f32 %v1783_v13, %v1443_v17 }
 0xa3f   : > { %v1445_v20 = vmul.f32 0.5, %v1444_v19 }
 0xa41   : > { %v1446_v21 = vsub.f32 1.5, %v1445_v20 }
 0xa42   : > { %v1785_v22 = vpop.eup %1784 }
 0xa43   : > { %v1447_v23 = vmul.f32 %v1783_v13, %v1446_v21  ;;  %v1453_v24 = vmul.f32 %v1785_v22, %v1441_v14  ;;  %vm1459_vm2 = vweird.f32 %v1785_v22 }
 0xa44   : > { %vm1460_vm4 = vmor %vm1458_vm3, %vm1459_vm2 }
 0xa45   : > { %v1451_v4 = vsel %vm1450_vm15, %v1783_v13, %v1447_v23  ;;  %v1454_v26 = vmul.f32 %v1785_v22, %v1453_v24 }
 0xa46   : > { %v1462_v27 = vmul.f32 %v1451_v4, %v1428_v61 }
 0xa47   : > { %v1455_v28 = vmul.f32 0.5, %v1454_v26 }
 0xa48   : > { %v1467_v29 = vmul.f32 %v1738_v25, %v1462_v27 }
 0xa49   : > { %v1456_v30 = vsub.f32 1.5, %v1455_v28 }
 0xa4a   : > { %v1472_v18 = vadd.f32 %v1739_v16, %v1467_v29 }
 0xa4b   : > { %v1457_v31 = vmul.f32 %v1785_v22, %v1456_v30 }
 0xa4c   : > { %1474 = vst.msk [vmem:[%s586_s16] sm:$0xff] %vm603_vm0, %v1472_v18 }
 0xa4d   : > { %v1461_v32 = vsel %vm1460_vm4, %v1785_v22, %v1457_v31 }
 0xa4e   : > { %v1463_v33 = vmul.f32 %v1461_v32, %v1429_v2 }
 0xa50   : > { %v1468_v34 = vmul.f32 %v1738_v25, %v1463_v33 }
 0xa52   : > { %v1473_v35 = vadd.f32 %v1739_v16, %v1468_v34 }
 0xa54   : > { %1475 = vst.msk [vmem:[%s586_s16 + $0x8] sm:$0xff] %vm603_vm0, %v1473_v35 }
 0xa55   : > { %1903 = shalt.err (!%p1900_p10)
}
 0xa56   : > { %s1960_s0 = smov 128   ;;  %s1961_s15 = smov 8  }
 0xa57   : > { %1662 = dma.vmem_to_hbm [thread:$0]  (%p2116_p4), %s1490_s30, 256, %s1492_s14, %s1477_s28, %s1960_s0, %s1960_s0, %s1961_s15  }
 0xa58 PF: > { %s2437_s21 = sld [smem:[#allocation12_spill]]  ;;  %p2439_p13 = scmp.ge.s32.totalorder %s1946_s24, 2 }
 0xa5a   : > { %p1676_p11 = pnand %p2439_p13, %p2120_p6 }
 0xa5c   : > { %p1677_p0 = pneg %p1676_p11 }
 0xa5e   : > { %s1506_s16 = sand.u32 1, %s2437_s21  }
 0xa5f   : > { %s1507_s6 = scalar_lea.sflag [#allocation4], %s1506_s16 }
 0xa60   : > { %1929 = dma.done.wait (%p1677_p0), %s1507_s6, 256  }
 0xa61   : > { %1931 = vsyncadd (%p1677_p0), %s1507_s6, 4294967040  ;;  %s2440_s24 = sld [smem:[#allocation14_spill]]  ;;  %s2443_s21 = smov %s1938_s22 }
 0xa62   : > { %s2441_s23 = sld [smem:[#allocation13_spill]] }
 0xa63   : > { %s2442_s29 = sld [smem:[#allocation15_spill]] }
 0xa67   : > { %p30_p2 = scmp.ge.s32.totalorder %s2440_s24, 4  }
 0xa68   : > { %s2444_s22 = smov %s2441_s23 }
 0xa69   : > { %s2445_s23 = smov %s2442_s29  ;;  %32 = sbr.rel (!%p30_p2) target bundleno = 13 (0xd), region = 140 }
 0xa6e   :  { %1513 = vsyncpa [#allocation3], 1 }
 0xa6f   :  { %1515 = vsyncpa [#allocation3 + $0x1], 1 }
 0xa70   :  { %1516 = vsyncpa [#allocation6], 1 }
 0xa71   :  { %1517 = vsyncpa [#allocation4], 1 }
 0xa72   :  { %1519 = vsyncpa [#allocation4 + $0x1], 1 }

</bundles_post_ra>
